<compile_context>
chip_gen: v7x
topology: tpu7x:2x2x1
jax: 0.10.0
libtpu: 0.0.40
codegen_flags: <defaults>
</compile_context>

<pallas_src>
import functools
import math

import jax
import jax.numpy as jnp
from jax.experimental import pallas as pl
from jax.experimental.pallas import tpu as pltpu


PATCH = 14
EMBED_DIM = 32
HEADS = 2
DEPTH = 2
MLP_RATIO = 4
MIN_DEPTH = 1e-3
LN_EPS = 1e-6
VMEM_LIMIT = 64 * 1024 * 1024   # safe on v5e/v6e (128 MiB) and v7x (64 MiB)


# --------------------------- in-kernel helpers -------------------------------

def _mxu_dot(a, w_bf16):
    """MXU matmul: bf16 operands (weights pre-cast outside), f32 accumulation."""
    return jnp.dot(a.astype(jnp.bfloat16), w_bf16,
                   preferred_element_type=jnp.float32)


def _layernorm(x, g, b, eps):
    """f32 layernorm over the lane (channel) axis; g/b are (1, C)."""
    mu = jnp.mean(x, axis=-1, keepdims=True)
    var = jnp.mean(jnp.square(x - mu), axis=-1, keepdims=True)
    return (x - mu) * jax.lax.rsqrt(var + eps) * g + b


def _full_spec(arr):
    """BlockSpec for a grid-invariant (whole-array) operand under a 1-D grid."""
    nd = arr.ndim
    return pl.BlockSpec(arr.shape, lambda b, _nd=nd: (0,) * _nd)


# --------------------------- normalization kernel ----------------------------

def _normalize_kernel(x_ref, s_ref, t_ref, o_ref):
    # y = x * (255/std) + (-mean/std): one FMA per element, f32.
    # s/t are (1, C, 1) -> broadcast along the lane (pixel) axis.
    o_ref[...] = x_ref[...] * s_ref[...] + t_ref[...]


def normalize_nchw(x, mean, std):
    """ImageNet-style per-channel normalization of 255*x, NCHW."""
    B, C, H, W = x.shape
    x3 = x.reshape(B, C, H * W)
    scale = (255.0 / std).reshape(1, C, 1).astype(jnp.float32)
    shift = (-mean / std).reshape(1, C, 1).astype(jnp.float32)
    y = pl.pallas_call(
        _normalize_kernel,
        grid=(B,),
        in_specs=[pl.BlockSpec((1, C, H * W), lambda b: (b, 0, 0)),
                  pl.BlockSpec((1, C, 1), lambda b: (0, 0, 0)),
                  pl.BlockSpec((1, C, 1), lambda b: (0, 0, 0))],
        out_specs=pl.BlockSpec((1, C, H * W), lambda b: (b, 0, 0)),
        out_shape=jax.ShapeDtypeStruct((B, C, H * W), jnp.float32),
        compiler_params=pltpu.CompilerParams(
            dimension_semantics=("parallel",)),
    )(x3, scale, shift)
    return y.reshape(B, C, H, W)


# --------------------------- patch embed (fused) ------------------------------

def _patch_embed_kernel(p_ref, w_ref, b_ref, cls_ref, pos_ref, o_ref):
    # p_ref: (1, Np, Cin) im2col patches of one image; w: (Cin, C) bf16;
    # b: (1, C); cls_ref: (1, C) = cls_token + pos_embed[0];
    # pos_ref: (Np, C) patch pos-emb.
    tok = _mxu_dot(p_ref[0], w_ref[...]) + b_ref[...] + pos_ref[...]
    o_ref[0, 0:1, :] = cls_ref[...]
    o_ref[0, 1:, :] = tok


def patch_embed_tokens(x, bp):
    """14x14 / stride-14 conv as im2col + MXU matmul, fused with the cls-token
    prepend and the positional-embedding add."""
    B, C, H, W = x.shape
    Hp, Wp = H // PATCH, W // PATCH
    Np = Hp * Wp
    Cin = C * PATCH * PATCH
    # TODO(synk): im2col is an XLA reshape/transpose here; for large images it
    # could be folded into the kernel via an Element-gather index_map.
    patches = x.reshape(B, C, Hp, PATCH, Wp, PATCH)
    patches = patches.transpose(0, 2, 4, 1, 3, 5).reshape(B, Np, Cin)

    Ctok = bp["patch_w"].shape[1]
    N = Np + 1
    pos = bp["pos_embed"].reshape(N, Ctok)
    cls_plus_pos = bp["cls_token"].reshape(1, Ctok) + pos[0:1]
    pos_patch = pos[1:]
    pb = bp["patch_b"].reshape(1, Ctok)
    pw = bp["patch_w"].astype(jnp.bfloat16)

    tokens = pl.pallas_call(
        _patch_embed_kernel,
        grid=(B,),
        in_specs=[pl.BlockSpec((1, Np, Cin), lambda b: (b, 0, 0)),
                  _full_spec(pw), _full_spec(pb),
                  _full_spec(cls_plus_pos), _full_spec(pos_patch)],
        out_specs=pl.BlockSpec((1, N, Ctok), lambda b: (b, 0, 0)),
        out_shape=jax.ShapeDtypeStruct((B, N, Ctok), jnp.float32),
        compiler_params=pltpu.CompilerParams(
            dimension_semantics=("parallel",),
            vmem_limit_bytes=VMEM_LIMIT),
    )(patches, pw, pb, cls_plus_pos, pos_patch)
    return tokens, (Hp, Wp)


# --------------------------- fused ViT block ----------------------------------

def _vit_block_kernel(x_ref, ln1_g_ref, ln1_b_ref, qkv_w_ref, qkv_b_ref,
                      proj_w_ref, proj_b_ref, ln2_g_ref, ln2_b_ref,
                      fc1_w_ref, fc1_b_ref, fc2_w_ref, fc2_b_ref,
                      o_ref, attn_scr, *, heads, scale, eps):
    x = x_ref[0].astype(jnp.float32)                             # (N, C)
    n, c = x.shape
    dh = c // heads

    # --- attention branch (pre-norm), everything resident in VMEM/vregs ---
    h = _layernorm(x, ln1_g_ref[...], ln1_b_ref[...], eps)
    qkv = _mxu_dot(h, qkv_w_ref[...]) + qkv_b_ref[...]           # (N, 3C) f32
    for hd in range(heads):                                      # static unroll
        q = qkv[:, hd * dh:(hd + 1) * dh]
        k = qkv[:, c + hd * dh:c + (hd + 1) * dh]
        v = qkv[:, 2 * c + hd * dh:2 * c + (hd + 1) * dh]
        s = jax.lax.dot_general(                                 # q @ k.T
            q.astype(jnp.bfloat16), k.astype(jnp.bfloat16),
            (((1,), (1,)), ((), ())),
            preferred_element_type=jnp.float32) * scale          # (N, N)
        m = jnp.max(s, axis=-1, keepdims=True)
        p = jnp.exp(s - m)
        p = p * pl.reciprocal(jnp.sum(p, axis=-1, keepdims=True), approx=True)
        attn_scr[:, hd * dh:(hd + 1) * dh] = jnp.dot(
            p.astype(jnp.bfloat16), v.astype(jnp.bfloat16),
            preferred_element_type=jnp.float32)
    o = _mxu_dot(attn_scr[...], proj_w_ref[...]) + proj_b_ref[...]
    x = x + o

    # --- MLP branch (pre-norm) ---
    h = _layernorm(x, ln2_g_ref[...], ln2_b_ref[...], eps)
    # TODO(synk): PyTorch nn.GELU default is exact erf; tanh approximation used.
    h = jax.nn.gelu(_mxu_dot(h, fc1_w_ref[...]) + fc1_b_ref[...],
                    approximate=True)
    h = _mxu_dot(h, fc2_w_ref[...]) + fc2_b_ref[...]
    o_ref[0] = (x + h).astype(o_ref.dtype)


def vit_block(x, p):
    B, N, C = x.shape
    Dh = C // HEADS
    hidden = p["fc1_w"].shape[1]
    tok_spec = pl.BlockSpec((1, N, C), lambda b: (b, 0, 0))
    args = [x,
            p["ln1_g"].reshape(1, C), p["ln1_b"].reshape(1, C),
            p["qkv_w"].astype(jnp.bfloat16), p["qkv_b"].reshape(1, 3 * C),
            p["proj_w"].astype(jnp.bfloat16), p["proj_b"].reshape(1, C),
            p["ln2_g"].reshape(1, C), p["ln2_b"].reshape(1, C),
            p["fc1_w"].astype(jnp.bfloat16), p["fc1_b"].reshape(1, hidden),
            p["fc2_w"].astype(jnp.bfloat16), p["fc2_b"].reshape(1, C)]
    in_specs = [tok_spec] + [_full_spec(a) for a in args[1:]]
    return pl.pallas_call(
        functools.partial(_vit_block_kernel, heads=HEADS,
                          scale=1.0 / math.sqrt(Dh), eps=LN_EPS),
        grid=(B,),
        in_specs=in_specs,
        out_specs=tok_spec,
        out_shape=jax.ShapeDtypeStruct((B, N, C), jnp.float32),
        scratch_shapes=[pltpu.VMEM((N, C), jnp.float32)],
        compiler_params=pltpu.CompilerParams(
            dimension_semantics=("parallel",),
            vmem_limit_bytes=VMEM_LIMIT),
    )(*args)


# --------------------------- final norm + depth head (fused) ------------------

def _final_head_kernel(x_ref, g_ref, b_ref, wf_ref, wc_ref, hb_ref,
                       tok_ref, depth_ref, *, eps, min_depth):
    x = x_ref[0].astype(jnp.float32)                       # (N, C)
    xn = _layernorm(x, g_ref[...], b_ref[...], eps)        # final backbone norm
    tok_ref[0] = xn.astype(tok_ref.dtype)
    cls = xn[0:1, :]                                       # (1, C)
    patches = xn[1:, :]                                    # (Np, C)
    # Linear depth head; the cls-token concat is folded into split weight
    # halves, and the [M,1] matmul is a VPU multiply + lane reduction.
    d_patch = jnp.sum(patches * wf_ref[...], axis=-1, keepdims=True)   # (Np, 1)
    d_cls = jnp.sum(cls * wc_ref[...], axis=-1, keepdims=True)         # (1, 1)
    d = jnp.maximum(d_patch + d_cls + hb_ref[...], 0.0) + min_depth
    depth_ref[0] = d


def final_norm_and_head(tokens, bp, hp):
    B, N, C = tokens.shape
    Np = N - 1
    g2 = bp["norm_g"].reshape(1, C)
    b2 = bp["norm_b"].reshape(1, C)
    w = hp["head_w"][:, 0]
    wf = w[:C].reshape(1, C)       # weights applied to the patch-token features
    wc = w[C:].reshape(1, C)       # weights applied to the broadcast cls token
    hb = hp["head_b"].reshape(1, 1)
    tok_spec = pl.BlockSpec((1, N, C), lambda b: (b, 0, 0))
    depth_spec = pl.BlockSpec((1, Np, 1), lambda b: (b, 0, 0))
    norm_tok, depth = pl.pallas_call(
        functools.partial(_final_head_kernel, eps=LN_EPS, min_depth=MIN_DEPTH),
        grid=(B,),
        in_specs=[tok_spec, _full_spec(g2), _full_spec(b2),
                  _full_spec(wf), _full_spec(wc), _full_spec(hb)],
        out_specs=(tok_spec, depth_spec),
        out_shape=(jax.ShapeDtypeStruct((B, N, C), jnp.float32),
                   jax.ShapeDtypeStruct((B, Np, 1), jnp.float32)),
        compiler_params=pltpu.CompilerParams(
            dimension_semantics=("parallel",),
            vmem_limit_bytes=VMEM_LIMIT),
    )(tokens, g2, b2, wf, wc, hb)
    return norm_tok, depth


# --------------------------- model glue (plain JAX) ---------------------------

def center_padding(x, multiple):
    """CenterPadding forward-pre-hook: pad H, W to a multiple of `multiple`."""
    B, C, H, W = x.shape

    def _pad(sz):
        new = math.ceil(sz / multiple) * multiple
        p = new - sz
        return (p // 2, p - p // 2)

    return jnp.pad(x, ((0, 0), (0, 0), _pad(H), _pad(W)))


def transform_imgs(x):
    """255*x -> normalize -> resize to size divisible by 14."""
    B, C, H, W = x.shape
    img_size = (H, W)
    mean = jnp.array([123.675, 116.28, 103.53], jnp.float32)
    std = jnp.array([58.395, 57.12, 57.375], jnp.float32)
    xn = normalize_nchw(x, mean, std)
    new_h, new_w = H - H % 14, W - W % 14
    if (new_h, new_w) != (H, W):
        # TODO(synk): torchvision Resize antialias semantics differ slightly.
        xn = jax.image.resize(xn, (B, C, new_h, new_w), method="bilinear")
    return xn, img_size


def transform_back(depth, img_size):
    B, C, _, _ = depth.shape
    return jax.image.resize(depth, (B, C, img_size[0], img_size[1]),
                            method="bilinear")


def dino_depther_forward(x, params):
    inp, img_size = transform_imgs(x)
    inp = center_padding(inp, PATCH)
    bp = params["backbone"]

    tokens, (Hp, Wp) = patch_embed_tokens(inp, bp)          # (B, N, C)
    for blk in bp["blocks"]:
        tokens = vit_block(tokens, blk)
    norm_tok, depth_tok = final_norm_and_head(tokens, bp, params["head"])

    B, N, C = norm_tok.shape
    # embeddings = concat(fmap, broadcast cls) in NCHW -- required module output.
    cls_tok = norm_tok[:, 0]                                          # (B, C)
    fmap = norm_tok[:, 1:].reshape(B, Hp, Wp, C).transpose(0, 3, 1, 2)
    cls_map = jnp.broadcast_to(cls_tok[:, :, None, None], (B, C, Hp, Wp))
    embeddings = jnp.concatenate([fmap, cls_map], axis=1)             # (B,2C,Hp,Wp)

    depth = depth_tok.reshape(B, Hp, Wp)[:, None]                     # (B,1,Hp,Wp)
    depth_maps = transform_back(depth, img_size)[:, 0]                # .squeeze(1)
    return depth_maps, embeddings


# --------------------------- deterministic params -----------------------------

def init_params(key, n_tokens):
    keys = iter(jax.random.split(key, 64))

    def nrm(shape, scale=0.02):
        return scale * jax.random.normal(next(keys), shape, jnp.float32)

    hidden = EMBED_DIM * MLP_RATIO
    blocks = []
    for _ in range(DEPTH):
        blocks.append(dict(
            ln1_g=jnp.ones((EMBED_DIM,), jnp.float32),
            ln1_b=jnp.zeros((EMBED_DIM,), jnp.float32),
            qkv_w=nrm((EMBED_DIM, 3 * EMBED_DIM)),
            qkv_b=jnp.zeros((3 * EMBED_DIM,), jnp.float32),
            proj_w=nrm((EMBED_DIM, EMBED_DIM)),
            proj_b=jnp.zeros((EMBED_DIM,), jnp.float32),
            ln2_g=jnp.ones((EMBED_DIM,), jnp.float32),
            ln2_b=jnp.zeros((EMBED_DIM,), jnp.float32),
            fc1_w=nrm((EMBED_DIM, hidden)),
            fc1_b=jnp.zeros((hidden,), jnp.float32),
            fc2_w=nrm((hidden, EMBED_DIM)),
            fc2_b=jnp.zeros((EMBED_DIM,), jnp.float32),
        ))
    backbone = dict(
        patch_w=nrm((3 * PATCH * PATCH, EMBED_DIM)),
        patch_b=jnp.zeros((EMBED_DIM,), jnp.float32),
        cls_token=nrm((1, 1, EMBED_DIM)),
        pos_embed=nrm((1, n_tokens, EMBED_DIM)),
        blocks=blocks,
        norm_g=jnp.ones((EMBED_DIM,), jnp.float32),
        norm_b=jnp.zeros((EMBED_DIM,), jnp.float32),
    )
    head = dict(
        head_w=nrm((2 * EMBED_DIM, 1)),
        head_b=jnp.zeros((1,), jnp.float32),
    )
    return dict(backbone=backbone, head=head)


# --------------------------------- main ---------------------------------------

if __name__ == "__main__":
    B, C, H, W = 2, 3, 28, 28          # divisible by patch=14 -> 2x2 tokens
    Hp, Wp = H // PATCH, W // PATCH
    n_tokens = Hp * Wp + 1             # patches + cls

    key = jax.random.PRNGKey(0)
    kx, kp = jax.random.split(key)
    x = jax.random.uniform(kx, (B, C, H, W), jnp.float32)   # images in [0,1], NCHW
    params = init_params(kp, n_tokens)

    fwd = jax.jit(dino_depther_forward)
    depth_maps, embeddings = fwd(x, params)
    jax.block_until_ready((depth_maps, embeddings))

    assert depth_maps.shape == (B, H, W), depth_maps.shape
    assert embeddings.shape == (B, 2 * EMBED_DIM, Hp, Wp), embeddings.shape
    assert bool(jnp.all(jnp.isfinite(depth_maps)))
    # relu + min_depth floors the head output at MIN_DEPTH; the bilinear
    # upsample back to image size can round a couple of ulps below it,
    # so allow a tiny tolerance here.
    assert bool(jnp.all(depth_maps >= MIN_DEPTH - 1e-5))
    print("KERNEL_OK")
</pallas_src>

<mosaic_0001>
module attributes {stable_mosaic.version = 11 : i64} {
  func.func @_normalize_kernel(%arg0: i32, %arg1: memref<1x3x784xf32, #tpu.memory_space<vmem>>, %arg2: memref<1x3x1xf32, #tpu.memory_space<vmem>>, %arg3: memref<1x3x1xf32, #tpu.memory_space<vmem>>, %arg4: memref<1x3x784xf32, #tpu.memory_space<vmem>>) attributes {dimension_semantics = [#tpu.dimension_semantics<parallel>], iteration_bounds = array<i64: 2>, scalar_prefetch = 0 : i64, scratch_operands = 0 : i64, tpu.core_type = #tpu.core_type<tc>, window_params = [{transform_indices = @transform_0, window_bounds = array<i64: 1, 3, 784>}, {pipeline_mode = #tpu.pipeline_mode<synchronous>, transform_indices = @transform_1, window_bounds = array<i64: 1, 3, 1>}, {pipeline_mode = #tpu.pipeline_mode<synchronous>, transform_indices = @transform_2, window_bounds = array<i64: 1, 3, 1>}, {transform_indices = @transform_3, window_bounds = array<i64: 1, 3, 784>}]} {
    %c0 = arith.constant 0 : index
    %c0_0 = arith.constant 0 : index
    %c0_1 = arith.constant 0 : index
    %0 = vector.load %arg1[%c0, %c0_0, %c0_1] : memref<1x3x784xf32, #tpu.memory_space<vmem>>, vector<1x3x784xf32>
    %c0_2 = arith.constant 0 : index
    %c0_3 = arith.constant 0 : index
    %c0_4 = arith.constant 0 : index
    %1 = vector.load %arg2[%c0_2, %c0_3, %c0_4] : memref<1x3x1xf32, #tpu.memory_space<vmem>>, vector<1x3x1xf32>
    %2 = vector.broadcast %1 : vector<1x3x1xf32> to vector<1x3x784xf32>
    %3 = arith.mulf %0, %2 : vector<1x3x784xf32>
    %c0_5 = arith.constant 0 : index
    %c0_6 = arith.constant 0 : index
    %c0_7 = arith.constant 0 : index
    %4 = vector.load %arg3[%c0_5, %c0_6, %c0_7] : memref<1x3x1xf32, #tpu.memory_space<vmem>>, vector<1x3x1xf32>
    %5 = vector.broadcast %4 : vector<1x3x1xf32> to vector<1x3x784xf32>
    %6 = arith.addf %3, %5 : vector<1x3x784xf32>
    %c0_8 = arith.constant 0 : index
    %c0_9 = arith.constant 0 : index
    %c0_10 = arith.constant 0 : index
    %7 = vector.load %arg4[%c0_8, %c0_9, %c0_10] : memref<1x3x784xf32, #tpu.memory_space<vmem>>, vector<1x3x784xf32>
    tpu.vector_store %arg4[%c0_8, %c0_9, %c0_10], %6 {strides = array<i32>} : memref<1x3x784xf32, #tpu.memory_space<vmem>>, vector<1x3x784xf32>,
    return
  }
  func.func @transform_0(%arg0: i32) -> (i32, i32, i32) {
    %c0_i32 = arith.constant 0 : i32
    %c0_i32_0 = arith.constant 0 : i32
    %c0_i32_1 = arith.constant 0 : i32
    return %arg0, %c0_i32, %c0_i32_0 : i32, i32, i32
  }
  func.func @transform_1(%arg0: i32) -> (i32, i32, i32) {
    %c0_i32 = arith.constant 0 : i32
    %c0_i32_0 = arith.constant 0 : i32
    %c0_i32_1 = arith.constant 0 : i32
    %c0_i32_2 = arith.constant 0 : i32
    return %c0_i32, %c0_i32_0, %c0_i32_1 : i32, i32, i32
  }
  func.func @transform_2(%arg0: i32) -> (i32, i32, i32) {
    %c0_i32 = arith.constant 0 : i32
    %c0_i32_0 = arith.constant 0 : i32
    %c0_i32_1 = arith.constant 0 : i32
    %c0_i32_2 = arith.constant 0 : i32
    return %c0_i32, %c0_i32_0, %c0_i32_1 : i32, i32, i32
  }
  func.func @transform_3(%arg0: i32) -> (i32, i32, i32) {
    %c0_i32 = arith.constant 0 : i32
    %c0_i32_0 = arith.constant 0 : i32
    %c0_i32_1 = arith.constant 0 : i32
    return %arg0, %c0_i32, %c0_i32_0 : i32, i32, i32
  }
}

module attributes {stable_mosaic.version = 11 : i64} {
  func.func @_patch_embed_kernel(%arg0: i32, %arg1: memref<1x4x588xf32, #tpu.memory_space<vmem>>, %arg2: memref<588x32xbf16, #tpu.memory_space<vmem>>, %arg3: memref<1x32xf32, #tpu.memory_space<vmem>>, %arg4: memref<1x32xf32, #tpu.memory_space<vmem>>, %arg5: memref<4x32xf32, #tpu.memory_space<vmem>>, %arg6: memref<1x5x32xf32, #tpu.memory_space<vmem>>) attributes {dimension_semantics = [#tpu.dimension_semantics<parallel>], iteration_bounds = array<i64: 2>, scalar_prefetch = 0 : i64, scratch_operands = 0 : i64, tpu.core_type = #tpu.core_type<tc>, window_params = [{transform_indices = @transform_0, window_bounds = array<i64: 1, 4, 588>}, {pipeline_mode = #tpu.pipeline_mode<synchronous>, transform_indices = @transform_1, window_bounds = array<i64: 588, 32>}, {pipeline_mode = #tpu.pipeline_mode<synchronous>, transform_indices = @transform_2, window_bounds = array<i64: 1, 32>}, {pipeline_mode = #tpu.pipeline_mode<synchronous>, transform_indices = @transform_3, window_bounds = array<i64: 1, 32>}, {pipeline_mode = #tpu.pipeline_mode<synchronous>, transform_indices = @transform_4, window_bounds = array<i64: 4, 32>}, {transform_indices = @transform_5, window_bounds = array<i64: 1, 5, 32>}]} {
    %c0 = arith.constant 0 : index
    %c0_0 = arith.constant 0 : index
    %c0_1 = arith.constant 0 : index
    %0 = vector.load %arg1[%c0, %c0_0, %c0_1] : memref<1x4x588xf32, #tpu.memory_space<vmem>>, vector<1x4x588xf32>
    %1 = vector.shape_cast %0 : vector<1x4x588xf32> to vector<4x588xf32>
    %c0_2 = arith.constant 0 : index
    %c0_3 = arith.constant 0 : index
    %2 = vector.load %arg2[%c0_2, %c0_3] : memref<588x32xbf16, #tpu.memory_space<vmem>>, vector<588x32xbf16>
    %3 = arith.truncf %1 : vector<4x588xf32> to vector<4x588xbf16>
    %cst = arith.constant dense<0.000000e+00> : vector<4x32xf32>
    %4 = tpu.matmul %3, %2, %cst {dimension_numbers = #tpu.dot_dimension_numbers<[1], [0], [0], [1], [0, 0, 1, 1], [], []>} : vector<4x588xbf16>, vector<588x32xbf16>, vector<4x32xf32> -> vector<4x32xf32>
    %c0_4 = arith.constant 0 : index
    %c0_5 = arith.constant 0 : index
    %5 = vector.load %arg3[%c0_4, %c0_5] : memref<1x32xf32, #tpu.memory_space<vmem>>, vector<1x32xf32>
    %6 = vector.broadcast %5 : vector<1x32xf32> to vector<4x32xf32>
    %7 = arith.addf %4, %6 : vector<4x32xf32>
    %c0_6 = arith.constant 0 : index
    %c0_7 = arith.constant 0 : index
    %8 = vector.load %arg5[%c0_6, %c0_7] : memref<4x32xf32, #tpu.memory_space<vmem>>, vector<4x32xf32>
    %9 = arith.addf %7, %8 : vector<4x32xf32>
    %c0_8 = arith.constant 0 : index
    %c0_9 = arith.constant 0 : index
    %10 = vector.load %arg4[%c0_8, %c0_9] : memref<1x32xf32, #tpu.memory_space<vmem>>, vector<1x32xf32>
    %c0_10 = arith.constant 0 : index
    %c0_11 = arith.constant 0 : index
    %c0_12 = arith.constant 0 : index
    %11 = vector.load %arg6[%c0_10, %c0_11, %c0_12] : memref<1x5x32xf32, #tpu.memory_space<vmem>>, vector<1x1x32xf32>
    %12 = vector.shape_cast %11 : vector<1x1x32xf32> to vector<1x32xf32>
    %13 = vector.shape_cast %10 : vector<1x32xf32> to vector<1x1x32xf32>
    tpu.vector_store %arg6[%c0_10, %c0_11, %c0_12], %13 {strides = array<i32>} : memref<1x5x32xf32, #tpu.memory_space<vmem>>, vector<1x1x32xf32>,
    %c0_13 = arith.constant 0 : index
    %c1 = arith.constant 1 : index
    %c0_14 = arith.constant 0 : index
    %14 = vector.load %arg6[%c0_13, %c1, %c0_14] : memref<1x5x32xf32, #tpu.memory_space<vmem>>, vector<1x4x32xf32>
    %15 = vector.shape_cast %14 : vector<1x4x32xf32> to vector<4x32xf32>
    %16 = vector.shape_cast %9 : vector<4x32xf32> to vector<1x4x32xf32>
    tpu.vector_store %arg6[%c0_13, %c1, %c0_14], %16 {strides = array<i32>} : memref<1x5x32xf32, #tpu.memory_space<vmem>>, vector<1x4x32xf32>,
    return
  }
  func.func @transform_0(%arg0: i32) -> (i32, i32, i32) {
    %c0_i32 = arith.constant 0 : i32
    %c0_i32_0 = arith.constant 0 : i32
    %c0_i32_1 = arith.constant 0 : i32
    return %arg0, %c0_i32, %c0_i32_0 : i32, i32, i32
  }
  func.func @transform_1(%arg0: i32) -> (i32, i32) {
    %c0_i32 = arith.constant 0 : i32
    %c0_i32_0 = arith.constant 0 : i32
    %c0_i32_1 = arith.constant 0 : i32
    return %c0_i32, %c0_i32_0 : i32, i32
  }
  func.func @transform_2(%arg0: i32) -> (i32, i32) {
    %c0_i32 = arith.constant 0 : i32
    %c0_i32_0 = arith.constant 0 : i32
    %c0_i32_1 = arith.constant 0 : i32
    return %c0_i32, %c0_i32_0 : i32, i32
  }
  func.func @transform_3(%arg0: i32) -> (i32, i32) {
    %c0_i32 = arith.constant 0 : i32
    %c0_i32_0 = arith.constant 0 : i32
    %c0_i32_1 = arith.constant 0 : i32
    return %c0_i32, %c0_i32_0 : i32, i32
  }
  func.func @transform_4(%arg0: i32) -> (i32, i32) {
    %c0_i32 = arith.constant 0 : i32
    %c0_i32_0 = arith.constant 0 : i32
    %c0_i32_1 = arith.constant 0 : i32
    return %c0_i32, %c0_i32_0 : i32, i32
  }
  func.func @transform_5(%arg0: i32) -> (i32, i32, i32) {
    %c0_i32 = arith.constant 0 : i32
    %c0_i32_0 = arith.constant 0 : i32
    %c0_i32_1 = arith.constant 0 : i32
    return %arg0, %c0_i32, %c0_i32_0 : i32, i32, i32
  }
}

module attributes {stable_mosaic.version = 11 : i64} {
  func.func @_final_head_kernel(%arg0: i32, %arg1: memref<1x5x32xf32, #tpu.memory_space<vmem>>, %arg2: memref<1x32xf32, #tpu.memory_space<vmem>>, %arg3: memref<1x32xf32, #tpu.memory_space<vmem>>, %arg4: memref<1x32xf32, #tpu.memory_space<vmem>>, %arg5: memref<1x32xf32, #tpu.memory_space<vmem>>, %arg6: memref<1x1xf32, #tpu.memory_space<vmem>>, %arg7: memref<1x5x32xf32, #tpu.memory_space<vmem>>, %arg8: memref<1x4x1xf32, #tpu.memory_space<vmem>>) attributes {dimension_semantics = [#tpu.dimension_semantics<parallel>], iteration_bounds = array<i64: 2>, scalar_prefetch = 0 : i64, scratch_operands = 0 : i64, tpu.core_type = #tpu.core_type<tc>, window_params = [{transform_indices = @transform_0, window_bounds = array<i64: 1, 5, 32>}, {pipeline_mode = #tpu.pipeline_mode<synchronous>, transform_indices = @transform_1, window_bounds = array<i64: 1, 32>}, {pipeline_mode = #tpu.pipeline_mode<synchronous>, transform_indices = @transform_2, window_bounds = array<i64: 1, 32>}, {pipeline_mode = #tpu.pipeline_mode<synchronous>, transform_indices = @transform_3, window_bounds = array<i64: 1, 32>}, {pipeline_mode = #tpu.pipeline_mode<synchronous>, transform_indices = @transform_4, window_bounds = array<i64: 1, 32>}, {pipeline_mode = #tpu.pipeline_mode<synchronous>, transform_indices = @transform_5, window_bounds = array<i64: 1, 1>}, {transform_indices = @transform_6, window_bounds = array<i64: 1, 5, 32>}, {transform_indices = @transform_7, window_bounds = array<i64: 1, 4, 1>}]} {
    %c0 = arith.constant 0 : index
    %c0_0 = arith.constant 0 : index
    %c0_1 = arith.constant 0 : index
    %0 = vector.load %arg1[%c0, %c0_0, %c0_1] : memref<1x5x32xf32, #tpu.memory_space<vmem>>, vector<1x5x32xf32>
    %1 = vector.shape_cast %0 : vector<1x5x32xf32> to vector<5x32xf32>
    %c0_2 = arith.constant 0 : index
    %c0_3 = arith.constant 0 : index
    %2 = vector.load %arg2[%c0_2, %c0_3] : memref<1x32xf32, #tpu.memory_space<vmem>>, vector<1x32xf32>
    %c0_4 = arith.constant 0 : index
    %c0_5 = arith.constant 0 : index
    %3 = vector.load %arg3[%c0_4, %c0_5] : memref<1x32xf32, #tpu.memory_space<vmem>>, vector<1x32xf32>
    %cst = arith.constant dense<0.000000e+00> : vector<5xf32>
    %4 = vector.multi_reduction <add>, %1, %cst [1] : vector<5x32xf32> to vector<5xf32>
    %5 = vector.shape_cast %4 : vector<5xf32> to vector<5x1xf32>
    %cst_6 = arith.constant 3.200000e+01 : f32
    %6 = vector.broadcast %cst_6 : f32 to vector<5x1xf32>
    %7 = arith.divf %5, %6 : vector<5x1xf32>
    %8 = vector.broadcast %7 : vector<5x1xf32> to vector<5x32xf32>
    %9 = arith.subf %1, %8 : vector<5x32xf32>
    %10 = arith.mulf %9, %9 : vector<5x32xf32>
    %cst_7 = arith.constant dense<0.000000e+00> : vector<5xf32>
    %11 = vector.multi_reduction <add>, %10, %cst_7 [1] : vector<5x32xf32> to vector<5xf32>
    %12 = vector.shape_cast %11 : vector<5xf32> to vector<5x1xf32>
    %cst_8 = arith.constant 3.200000e+01 : f32
    %13 = vector.broadcast %cst_8 : f32 to vector<5x1xf32>
    %14 = arith.divf %12, %13 : vector<5x1xf32>
    %15 = vector.broadcast %7 : vector<5x1xf32> to vector<5x32xf32>
    %16 = arith.subf %1, %15 : vector<5x32xf32>
    %cst_9 = arith.constant 9.99999997E-7 : f32
    %17 = vector.broadcast %cst_9 : f32 to vector<5x1xf32>
    %18 = arith.addf %14, %17 : vector<5x1xf32>
    %19 = math.rsqrt %18 : vector<5x1xf32>
    %20 = vector.broadcast %19 : vector<5x1xf32> to vector<5x32xf32>
    %21 = arith.mulf %16, %20 : vector<5x32xf32>
    %22 = vector.broadcast %2 : vector<1x32xf32> to vector<5x32xf32>
    %23 = arith.mulf %21, %22 : vector<5x32xf32>
    %24 = vector.broadcast %3 : vector<1x32xf32> to vector<5x32xf32>
    %25 = arith.addf %23, %24 : vector<5x32xf32>
    %c0_10 = arith.constant 0 : index
    %c0_11 = arith.constant 0 : index
    %c0_12 = arith.constant 0 : index
    %26 = vector.load %arg7[%c0_10, %c0_11, %c0_12] : memref<1x5x32xf32, #tpu.memory_space<vmem>>, vector<1x5x32xf32>
    %27 = vector.shape_cast %26 : vector<1x5x32xf32> to vector<5x32xf32>
    %28 = vector.shape_cast %25 : vector<5x32xf32> to vector<1x5x32xf32>
    tpu.vector_store %arg7[%c0_10, %c0_11, %c0_12], %28 {strides = array<i32>} : memref<1x5x32xf32, #tpu.memory_space<vmem>>, vector<1x5x32xf32>,
    %29 = vector.extract_strided_slice %25 {offsets = [0, 0], sizes = [1, 32], strides = [1, 1]} : vector<5x32xf32> to vector<1x32xf32>
    %30 = vector.extract_strided_slice %25 {offsets = [1, 0], sizes = [4, 32], strides = [1, 1]} : vector<5x32xf32> to vector<4x32xf32>
    %c0_13 = arith.constant 0 : index
    %c0_14 = arith.constant 0 : index
    %31 = vector.load %arg4[%c0_13, %c0_14] : memref<1x32xf32, #tpu.memory_space<vmem>>, vector<1x32xf32>
    %32 = vector.broadcast %31 : vector<1x32xf32> to vector<4x32xf32>
    %33 = arith.mulf %30, %32 : vector<4x32xf32>
    %cst_15 = arith.constant dense<0.000000e+00> : vector<4xf32>
    %34 = vector.multi_reduction <add>, %33, %cst_15 [1] : vector<4x32xf32> to vector<4xf32>
    %35 = vector.shape_cast %34 : vector<4xf32> to vector<4x1xf32>
    %c0_16 = arith.constant 0 : index
    %c0_17 = arith.constant 0 : index
    %36 = vector.load %arg5[%c0_16, %c0_17] : memref<1x32xf32, #tpu.memory_space<vmem>>, vector<1x32xf32>
    %37 = arith.mulf %29, %36 : vector<1x32xf32>
    %cst_18 = arith.constant dense<0.000000e+00> : vector<1xf32>
    %38 = vector.multi_reduction <add>, %37, %cst_18 [1] : vector<1x32xf32> to vector<1xf32>
    %39 = vector.shape_cast %38 : vector<1xf32> to vector<1x1xf32>
    %40 = vector.broadcast %39 : vector<1x1xf32> to vector<4x1xf32>
    %41 = arith.addf %35, %40 : vector<4x1xf32>
    %c0_19 = arith.constant 0 : index
    %c0_20 = arith.constant 0 : index
    %42 = vector.load %arg6[%c0_19, %c0_20] : memref<1x1xf32, #tpu.memory_space<vmem>>, vector<1x1xf32>
    %43 = vector.broadcast %42 : vector<1x1xf32> to vector<4x1xf32>
    %44 = arith.addf %41, %43 : vector<4x1xf32>
    %cst_21 = arith.constant 0.000000e+00 : f32
    %45 = vector.broadcast %cst_21 : f32 to vector<4x1xf32>
    %46 = arith.maximumf %44, %45 : vector<4x1xf32>
    %cst_22 = arith.constant 1.000000e-03 : f32
    %47 = vector.broadcast %cst_22 : f32 to vector<4x1xf32>
    %48 = arith.addf %46, %47 : vector<4x1xf32>
    %c0_23 = arith.constant 0 : index
    %c0_24 = arith.constant 0 : index
    %c0_25 = arith.constant 0 : index
    %49 = vector.load %arg8[%c0_23, %c0_24, %c0_25] : memref<1x4x1xf32, #tpu.memory_space<vmem>>, vector<1x4x1xf32>
    %50 = vector.shape_cast %49 : vector<1x4x1xf32> to vector<4x1xf32>
    %51 = vector.shape_cast %48 : vector<4x1xf32> to vector<1x4x1xf32>
    tpu.vector_store %arg8[%c0_23, %c0_24, %c0_25], %51 {strides = array<i32>} : memref<1x4x1xf32, #tpu.memory_space<vmem>>, vector<1x4x1xf32>,
    return
  }
  func.func @transform_0(%arg0: i32) -> (i32, i32, i32) {
    %c0_i32 = arith.constant 0 : i32
    %c0_i32_0 = arith.constant 0 : i32
    %c0_i32_1 = arith.constant 0 : i32
    return %arg0, %c0_i32, %c0_i32_0 : i32, i32, i32
  }
  func.func @transform_1(%arg0: i32) -> (i32, i32) {
    %c0_i32 = arith.constant 0 : i32
    %c0_i32_0 = arith.constant 0 : i32
    %c0_i32_1 = arith.constant 0 : i32
    return %c0_i32, %c0_i32_0 : i32, i32
  }
  func.func @transform_2(%arg0: i32) -> (i32, i32) {
    %c0_i32 = arith.constant 0 : i32
    %c0_i32_0 = arith.constant 0 : i32
    %c0_i32_1 = arith.constant 0 : i32
    return %c0_i32, %c0_i32_0 : i32, i32
  }
  func.func @transform_3(%arg0: i32) -> (i32, i32) {
    %c0_i32 = arith.constant 0 : i32
    %c0_i32_0 = arith.constant 0 : i32
    %c0_i32_1 = arith.constant 0 : i32
    return %c0_i32, %c0_i32_0 : i32, i32
  }
  func.func @transform_4(%arg0: i32) -> (i32, i32) {
    %c0_i32 = arith.constant 0 : i32
    %c0_i32_0 = arith.constant 0 : i32
    %c0_i32_1 = arith.constant 0 : i32
    return %c0_i32, %c0_i32_0 : i32, i32
  }
  func.func @transform_5(%arg0: i32) -> (i32, i32) {
    %c0_i32 = arith.constant 0 : i32
    %c0_i32_0 = arith.constant 0 : i32
    %c0_i32_1 = arith.constant 0 : i32
    return %c0_i32, %c0_i32_0 : i32, i32
  }
  func.func @transform_6(%arg0: i32) -> (i32, i32, i32) {
    %c0_i32 = arith.constant 0 : i32
    %c0_i32_0 = arith.constant 0 : i32
    %c0_i32_1 = arith.constant 0 : i32
    return %arg0, %c0_i32, %c0_i32_0 : i32, i32, i32
  }
  func.func @transform_7(%arg0: i32) -> (i32, i32, i32) {
    %c0_i32 = arith.constant 0 : i32
    %c0_i32_0 = arith.constant 0 : i32
    %c0_i32_1 = arith.constant 0 : i32
    return %arg0, %c0_i32, %c0_i32_0 : i32, i32, i32
  }
}

module attributes {stable_mosaic.version = 11 : i64} {
  func.func @_vit_block_kernel(%arg0: i32, %arg1: memref<1x5x32xf32, #tpu.memory_space<vmem>>, %arg2: memref<1x32xf32, #tpu.memory_space<vmem>>, %arg3: memref<1x32xf32, #tpu.memory_space<vmem>>, %arg4: memref<32x96xbf16, #tpu.memory_space<vmem>>, %arg5: memref<1x96xf32, #tpu.memory_space<vmem>>, %arg6: memref<32x32xbf16, #tpu.memory_space<vmem>>, %arg7: memref<1x32xf32, #tpu.memory_space<vmem>>, %arg8: memref<1x32xf32, #tpu.memory_space<vmem>>, %arg9: memref<1x32xf32, #tpu.memory_space<vmem>>, %arg10: memref<32x128xbf16, #tpu.memory_space<vmem>>, %arg11: memref<1x128xf32, #tpu.memory_space<vmem>>, %arg12: memref<128x32xbf16, #tpu.memory_space<vmem>>, %arg13: memref<1x32xf32, #tpu.memory_space<vmem>>, %arg14: memref<1x5x32xf32, #tpu.memory_space<vmem>>, %arg15: memref<5x32xf32, #tpu.memory_space<vmem>>) attributes {dimension_semantics = [#tpu.dimension_semantics<parallel>], iteration_bounds = array<i64: 2>, scalar_prefetch = 0 : i64, scratch_operands = 1 : i64, tpu.core_type = #tpu.core_type<tc>, window_params = [{transform_indices = @transform_0, window_bounds = array<i64: 1, 5, 32>}, {pipeline_mode = #tpu.pipeline_mode<synchronous>, transform_indices = @transform_1, window_bounds = array<i64: 1, 32>}, {pipeline_mode = #tpu.pipeline_mode<synchronous>, transform_indices = @transform_2, window_bounds = array<i64: 1, 32>}, {pipeline_mode = #tpu.pipeline_mode<synchronous>, transform_indices = @transform_3, window_bounds = array<i64: 32, 96>}, {pipeline_mode = #tpu.pipeline_mode<synchronous>, transform_indices = @transform_4, window_bounds = array<i64: 1, 96>}, {pipeline_mode = #tpu.pipeline_mode<synchronous>, transform_indices = @transform_5, window_bounds = array<i64: 32, 32>}, {pipeline_mode = #tpu.pipeline_mode<synchronous>, transform_indices = @transform_6, window_bounds = array<i64: 1, 32>}, {pipeline_mode = #tpu.pipeline_mode<synchronous>, transform_indices = @transform_7, window_bounds = array<i64: 1, 32>}, {pipeline_mode = #tpu.pipeline_mode<synchronous>, transform_indices = @transform_8, window_bounds = array<i64: 1, 32>}, {pipeline_mode = #tpu.pipeline_mode<synchronous>, transform_indices = @transform_9, window_bounds = array<i64: 32, 128>}, {pipeline_mode = #tpu.pipeline_mode<synchronous>, transform_indices = @transform_10, window_bounds = array<i64: 1, 128>}, {pipeline_mode = #tpu.pipeline_mode<synchronous>, transform_indices = @transform_11, window_bounds = array<i64: 128, 32>}, {pipeline_mode = #tpu.pipeline_mode<synchronous>, transform_indices = @transform_12, window_bounds = array<i64: 1, 32>}, {transform_indices = @transform_13, window_bounds = array<i64: 1, 5, 32>}]} {
    %c0 = arith.constant 0 : index
    %c0_0 = arith.constant 0 : index
    %c0_1 = arith.constant 0 : index
    %0 = vector.load %arg1[%c0, %c0_0, %c0_1] : memref<1x5x32xf32, #tpu.memory_space<vmem>>, vector<1x5x32xf32>
    %1 = vector.shape_cast %0 : vector<1x5x32xf32> to vector<5x32xf32>
    %c0_2 = arith.constant 0 : index
    %c0_3 = arith.constant 0 : index
    %2 = vector.load %arg2[%c0_2, %c0_3] : memref<1x32xf32, #tpu.memory_space<vmem>>, vector<1x32xf32>
    %c0_4 = arith.constant 0 : index
    %c0_5 = arith.constant 0 : index
    %3 = vector.load %arg3[%c0_4, %c0_5] : memref<1x32xf32, #tpu.memory_space<vmem>>, vector<1x32xf32>
    %cst = arith.constant dense<0.000000e+00> : vector<5xf32>
    %4 = vector.multi_reduction <add>, %1, %cst [1] : vector<5x32xf32> to vector<5xf32>
    %5 = vector.shape_cast %4 : vector<5xf32> to vector<5x1xf32>
    %cst_6 = arith.constant 3.200000e+01 : f32
    %6 = vector.broadcast %cst_6 : f32 to vector<5x1xf32>
    %7 = arith.divf %5, %6 : vector<5x1xf32>
    %8 = vector.broadcast %7 : vector<5x1xf32> to vector<5x32xf32>
    %9 = arith.subf %1, %8 : vector<5x32xf32>
    %10 = arith.mulf %9, %9 : vector<5x32xf32>
    %cst_7 = arith.constant dense<0.000000e+00> : vector<5xf32>
    %11 = vector.multi_reduction <add>, %10, %cst_7 [1] : vector<5x32xf32> to vector<5xf32>
    %12 = vector.shape_cast %11 : vector<5xf32> to vector<5x1xf32>
    %cst_8 = arith.constant 3.200000e+01 : f32
    %13 = vector.broadcast %cst_8 : f32 to vector<5x1xf32>
    %14 = arith.divf %12, %13 : vector<5x1xf32>
    %15 = vector.broadcast %7 : vector<5x1xf32> to vector<5x32xf32>
    %16 = arith.subf %1, %15 : vector<5x32xf32>
    %cst_9 = arith.constant 9.99999997E-7 : f32
    %17 = vector.broadcast %cst_9 : f32 to vector<5x1xf32>
    %18 = arith.addf %14, %17 : vector<5x1xf32>
    %19 = math.rsqrt %18 : vector<5x1xf32>
    %20 = vector.broadcast %19 : vector<5x1xf32> to vector<5x32xf32>
    %21 = arith.mulf %16, %20 : vector<5x32xf32>
    %22 = vector.broadcast %2 : vector<1x32xf32> to vector<5x32xf32>
    %23 = arith.mulf %21, %22 : vector<5x32xf32>
    %24 = vector.broadcast %3 : vector<1x32xf32> to vector<5x32xf32>
    %25 = arith.addf %23, %24 : vector<5x32xf32>
    %c0_10 = arith.constant 0 : index
    %c0_11 = arith.constant 0 : index
    %26 = vector.load %arg4[%c0_10, %c0_11] : memref<32x96xbf16, #tpu.memory_space<vmem>>, vector<32x96xbf16>
    %27 = arith.truncf %25 : vector<5x32xf32> to vector<5x32xbf16>
    %cst_12 = arith.constant dense<0.000000e+00> : vector<5x96xf32>
    %28 = tpu.matmul %27, %26, %cst_12 {dimension_numbers = #tpu.dot_dimension_numbers<[1], [0], [0], [1], [0, 0, 1, 1], [], []>} : vector<5x32xbf16>, vector<32x96xbf16>, vector<5x96xf32> -> vector<5x96xf32>
    %c0_13 = arith.constant 0 : index
    %c0_14 = arith.constant 0 : index
    %29 = vector.load %arg5[%c0_13, %c0_14] : memref<1x96xf32, #tpu.memory_space<vmem>>, vector<1x96xf32>
    %30 = vector.broadcast %29 : vector<1x96xf32> to vector<5x96xf32>
    %31 = arith.addf %28, %30 : vector<5x96xf32>
    %32 = vector.extract_strided_slice %31 {offsets = [0, 0], sizes = [5, 16], strides = [1, 1]} : vector<5x96xf32> to vector<5x16xf32>
    %33 = vector.extract_strided_slice %31 {offsets = [0, 32], sizes = [5, 16], strides = [1, 1]} : vector<5x96xf32> to vector<5x16xf32>
    %34 = vector.extract_strided_slice %31 {offsets = [0, 64], sizes = [5, 16], strides = [1, 1]} : vector<5x96xf32> to vector<5x16xf32>
    %35 = arith.truncf %32 : vector<5x16xf32> to vector<5x16xbf16>
    %36 = arith.truncf %33 : vector<5x16xf32> to vector<5x16xbf16>
    %cst_15 = arith.constant dense<0.000000e+00> : vector<5x5xf32>
    %37 = tpu.matmul %35, %36, %cst_15 {dimension_numbers = #tpu.dot_dimension_numbers<[1], [1], [0], [0], [0, 0, 1, 0], [], []>} : vector<5x16xbf16>, vector<5x16xbf16>, vector<5x5xf32> -> vector<5x5xf32>
    %cst_16 = arith.constant 2.500000e-01 : f32
    %38 = vector.broadcast %cst_16 : f32 to vector<5x5xf32>
    %39 = arith.mulf %37, %38 : vector<5x5xf32>
    %cst_17 = arith.constant dense<0xFF800000> : vector<5xf32>
    %40 = vector.multi_reduction <maximumf>, %39, %cst_17 [1] : vector<5x5xf32> to vector<5xf32>
    %41 = vector.shape_cast %40 : vector<5xf32> to vector<5x1xf32>
    %42 = vector.broadcast %41 : vector<5x1xf32> to vector<5x5xf32>
    %43 = arith.subf %39, %42 : vector<5x5xf32>
    %44 = math.exp %43 : vector<5x5xf32>
    %cst_18 = arith.constant dense<0.000000e+00> : vector<5xf32>
    %45 = vector.multi_reduction <add>, %44, %cst_18 [1] : vector<5x5xf32> to vector<5xf32>
    %46 = vector.shape_cast %45 : vector<5xf32> to vector<5x1xf32>
    %47 = tpu.reciprocal %46 {approx = true} : vector<5x1xf32> -> vector<5x1xf32>
    %48 = vector.broadcast %47 : vector<5x1xf32> to vector<5x5xf32>
    %49 = arith.mulf %44, %48 : vector<5x5xf32>
    %50 = arith.truncf %49 : vector<5x5xf32> to vector<5x5xbf16>
    %51 = arith.truncf %34 : vector<5x16xf32> to vector<5x16xbf16>
    %cst_19 = arith.constant dense<0.000000e+00> : vector<5x16xf32>
    %52 = tpu.matmul %50, %51, %cst_19 {dimension_numbers = #tpu.dot_dimension_numbers<[1], [0], [0], [1], [0, 0, 1, 1], [], []>} : vector<5x5xbf16>, vector<5x16xbf16>, vector<5x16xf32> -> vector<5x16xf32>
    %c0_20 = arith.constant 0 : index
    %c0_21 = arith.constant 0 : index
    %53 = vector.load %arg15[%c0_20, %c0_21] : memref<5x32xf32, #tpu.memory_space<vmem>>, vector<5x16xf32>
    tpu.vector_store %arg15[%c0_20, %c0_21], %52 {strides = array<i32>} : memref<5x32xf32, #tpu.memory_space<vmem>>, vector<5x16xf32>,
    %54 = vector.extract_strided_slice %31 {offsets = [0, 16], sizes = [5, 16], strides = [1, 1]} : vector<5x96xf32> to vector<5x16xf32>
    %55 = vector.extract_strided_slice %31 {offsets = [0, 48], sizes = [5, 16], strides = [1, 1]} : vector<5x96xf32> to vector<5x16xf32>
    %56 = vector.extract_strided_slice %31 {offsets = [0, 80], sizes = [5, 16], strides = [1, 1]} : vector<5x96xf32> to vector<5x16xf32>
    %57 = arith.truncf %54 : vector<5x16xf32> to vector<5x16xbf16>
    %58 = arith.truncf %55 : vector<5x16xf32> to vector<5x16xbf16>
    %cst_22 = arith.constant dense<0.000000e+00> : vector<5x5xf32>
    %59 = tpu.matmul %57, %58, %cst_22 {dimension_numbers = #tpu.dot_dimension_numbers<[1], [1], [0], [0], [0, 0, 1, 0], [], []>} : vector<5x16xbf16>, vector<5x16xbf16>, vector<5x5xf32> -> vector<5x5xf32>
    %cst_23 = arith.constant 2.500000e-01 : f32
    %60 = vector.broadcast %cst_23 : f32 to vector<5x5xf32>
    %61 = arith.mulf %59, %60 : vector<5x5xf32>
    %cst_24 = arith.constant dense<0xFF800000> : vector<5xf32>
    %62 = vector.multi_reduction <maximumf>, %61, %cst_24 [1] : vector<5x5xf32> to vector<5xf32>
    %63 = vector.shape_cast %62 : vector<5xf32> to vector<5x1xf32>
    %64 = vector.broadcast %63 : vector<5x1xf32> to vector<5x5xf32>
    %65 = arith.subf %61, %64 : vector<5x5xf32>
    %66 = math.exp %65 : vector<5x5xf32>
    %cst_25 = arith.constant dense<0.000000e+00> : vector<5xf32>
    %67 = vector.multi_reduction <add>, %66, %cst_25 [1] : vector<5x5xf32> to vector<5xf32>
    %68 = vector.shape_cast %67 : vector<5xf32> to vector<5x1xf32>
    %69 = tpu.reciprocal %68 {approx = true} : vector<5x1xf32> -> vector<5x1xf32>
    %70 = vector.broadcast %69 : vector<5x1xf32> to vector<5x5xf32>
    %71 = arith.mulf %66, %70 : vector<5x5xf32>
    %72 = arith.truncf %71 : vector<5x5xf32> to vector<5x5xbf16>
    %73 = arith.truncf %56 : vector<5x16xf32> to vector<5x16xbf16>
    %cst_26 = arith.constant dense<0.000000e+00> : vector<5x16xf32>
    %74 = tpu.matmul %72, %73, %cst_26 {dimension_numbers = #tpu.dot_dimension_numbers<[1], [0], [0], [1], [0, 0, 1, 1], [], []>} : vector<5x5xbf16>, vector<5x16xbf16>, vector<5x16xf32> -> vector<5x16xf32>
    %c0_27 = arith.constant 0 : index
    %c16 = arith.constant 16 : index
    %75 = vector.load %arg15[%c0_27, %c16] : memref<5x32xf32, #tpu.memory_space<vmem>>, vector<5x16xf32>
    tpu.vector_store %arg15[%c0_27, %c16], %74 {strides = array<i32>} : memref<5x32xf32, #tpu.memory_space<vmem>>, vector<5x16xf32>,
    %c0_28 = arith.constant 0 : index
    %c0_29 = arith.constant 0 : index
    %76 = vector.load %arg15[%c0_28, %c0_29] : memref<5x32xf32, #tpu.memory_space<vmem>>, vector<5x32xf32>
    %c0_30 = arith.constant 0 : index
    %c0_31 = arith.constant 0 : index
    %77 = vector.load %arg6[%c0_30, %c0_31] : memref<32x32xbf16, #tpu.memory_space<vmem>>, vector<32x32xbf16>
    %78 = arith.truncf %76 : vector<5x32xf32> to vector<5x32xbf16>
    %cst_32 = arith.constant dense<0.000000e+00> : vector<5x32xf32>
    %79 = tpu.matmul %78, %77, %cst_32 {dimension_numbers = #tpu.dot_dimension_numbers<[1], [0], [0], [1], [0, 0, 1, 1], [], []>} : vector<5x32xbf16>, vector<32x32xbf16>, vector<5x32xf32> -> vector<5x32xf32>
    %c0_33 = arith.constant 0 : index
    %c0_34 = arith.constant 0 : index
    %80 = vector.load %arg7[%c0_33, %c0_34] : memref<1x32xf32, #tpu.memory_space<vmem>>, vector<1x32xf32>
    %81 = vector.broadcast %80 : vector<1x32xf32> to vector<5x32xf32>
    %82 = arith.addf %79, %81 : vector<5x32xf32>
    %83 = arith.addf %1, %82 : vector<5x32xf32>
    %c0_35 = arith.constant 0 : index
    %c0_36 = arith.constant 0 : index
    %84 = vector.load %arg8[%c0_35, %c0_36] : memref<1x32xf32, #tpu.memory_space<vmem>>, vector<1x32xf32>
    %c0_37 = arith.constant 0 : index
    %c0_38 = arith.constant 0 : index
    %85 = vector.load %arg9[%c0_37, %c0_38] : memref<1x32xf32, #tpu.memory_space<vmem>>, vector<1x32xf32>
    %cst_39 = arith.constant dense<0.000000e+00> : vector<5xf32>
    %86 = vector.multi_reduction <add>, %83, %cst_39 [1] : vector<5x32xf32> to vector<5xf32>
    %87 = vector.shape_cast %86 : vector<5xf32> to vector<5x1xf32>
    %cst_40 = arith.constant 3.200000e+01 : f32
    %88 = vector.broadcast %cst_40 : f32 to vector<5x1xf32>
    %89 = arith.divf %87, %88 : vector<5x1xf32>
    %90 = vector.broadcast %89 : vector<5x1xf32> to vector<5x32xf32>
    %91 = arith.subf %83, %90 : vector<5x32xf32>
    %92 = arith.mulf %91, %91 : vector<5x32xf32>
    %cst_41 = arith.constant dense<0.000000e+00> : vector<5xf32>
    %93 = vector.multi_reduction <add>, %92, %cst_41 [1] : vector<5x32xf32> to vector<5xf32>
    %94 = vector.shape_cast %93 : vector<5xf32> to vector<5x1xf32>
    %cst_42 = arith.constant 3.200000e+01 : f32
    %95 = vector.broadcast %cst_42 : f32 to vector<5x1xf32>
    %96 = arith.divf %94, %95 : vector<5x1xf32>
    %97 = vector.broadcast %89 : vector<5x1xf32> to vector<5x32xf32>
    %98 = arith.subf %83, %97 : vector<5x32xf32>
    %cst_43 = arith.constant 9.99999997E-7 : f32
    %99 = vector.broadcast %cst_43 : f32 to vector<5x1xf32>
    %100 = arith.addf %96, %99 : vector<5x1xf32>
    %101 = math.rsqrt %100 : vector<5x1xf32>
    %102 = vector.broadcast %101 : vector<5x1xf32> to vector<5x32xf32>
    %103 = arith.mulf %98, %102 : vector<5x32xf32>
    %104 = vector.broadcast %84 : vector<1x32xf32> to vector<5x32xf32>
    %105 = arith.mulf %103, %104 : vector<5x32xf32>
    %106 = vector.broadcast %85 : vector<1x32xf32> to vector<5x32xf32>
    %107 = arith.addf %105, %106 : vector<5x32xf32>
    %c0_44 = arith.constant 0 : index
    %c0_45 = arith.constant 0 : index
    %108 = vector.load %arg10[%c0_44, %c0_45] : memref<32x128xbf16, #tpu.memory_space<vmem>>, vector<32x128xbf16>
    %109 = arith.truncf %107 : vector<5x32xf32> to vector<5x32xbf16>
    %cst_46 = arith.constant dense<0.000000e+00> : vector<5x128xf32>
    %110 = tpu.matmul %109, %108, %cst_46 {dimension_numbers = #tpu.dot_dimension_numbers<[1], [0], [0], [1], [0, 0, 1, 1], [], []>} : vector<5x32xbf16>, vector<32x128xbf16>, vector<5x128xf32> -> vector<5x128xf32>
    %c0_47 = arith.constant 0 : index
    %c0_48 = arith.constant 0 : index
    %111 = vector.load %arg11[%c0_47, %c0_48] : memref<1x128xf32, #tpu.memory_space<vmem>>, vector<1x128xf32>
    %112 = vector.broadcast %111 : vector<1x128xf32> to vector<5x128xf32>
    %113 = arith.addf %110, %112 : vector<5x128xf32>
    %114 = arith.mulf %113, %113 : vector<5x128xf32>
    %115 = arith.mulf %113, %114 : vector<5x128xf32>
    %cst_49 = arith.constant 4.471500e-02 : f32
    %116 = vector.broadcast %cst_49 : f32 to vector<5x128xf32>
    %117 = arith.mulf %116, %115 : vector<5x128xf32>
    %118 = arith.addf %113, %117 : vector<5x128xf32>
    %cst_50 = arith.constant 0.797884583 : f32
    %119 = vector.broadcast %cst_50 : f32 to vector<5x128xf32>
    %120 = arith.mulf %119, %118 : vector<5x128xf32>
    %121 = math.tanh %120 : vector<5x128xf32>
    %cst_51 = arith.constant 1.000000e+00 : f32
    %122 = vector.broadcast %cst_51 : f32 to vector<5x128xf32>
    %123 = arith.addf %122, %121 : vector<5x128xf32>
    %cst_52 = arith.constant 5.000000e-01 : f32
    %124 = vector.broadcast %cst_52 : f32 to vector<5x128xf32>
    %125 = arith.mulf %124, %123 : vector<5x128xf32>
    %126 = arith.mulf %113, %125 : vector<5x128xf32>
    %c0_53 = arith.constant 0 : index
    %c0_54 = arith.constant 0 : index
    %127 = vector.load %arg12[%c0_53, %c0_54] : memref<128x32xbf16, #tpu.memory_space<vmem>>, vector<128x32xbf16>
    %128 = arith.truncf %126 : vector<5x128xf32> to vector<5x128xbf16>
    %cst_55 = arith.constant dense<0.000000e+00> : vector<5x32xf32>
    %129 = tpu.matmul %128, %127, %cst_55 {dimension_numbers = #tpu.dot_dimension_numbers<[1], [0], [0], [1], [0, 0, 1, 1], [], []>} : vector<5x128xbf16>, vector<128x32xbf16>, vector<5x32xf32> -> vector<5x32xf32>
    %c0_56 = arith.constant 0 : index
    %c0_57 = arith.constant 0 : index
    %130 = vector.load %arg13[%c0_56, %c0_57] : memref<1x32xf32, #tpu.memory_space<vmem>>, vector<1x32xf32>
    %131 = vector.broadcast %130 : vector<1x32xf32> to vector<5x32xf32>
    %132 = arith.addf %129, %131 : vector<5x32xf32>
    %133 = arith.addf %83, %132 : vector<5x32xf32>
    %c0_58 = arith.constant 0 : index
    %c0_59 = arith.constant 0 : index
    %c0_60 = arith.constant 0 : index
    %134 = vector.load %arg14[%c0_58, %c0_59, %c0_60] : memref<1x5x32xf32, #tpu.memory_space<vmem>>, vector<1x5x32xf32>
    %135 = vector.shape_cast %134 : vector<1x5x32xf32> to vector<5x32xf32>
    %136 = vector.shape_cast %133 : vector<5x32xf32> to vector<1x5x32xf32>
    tpu.vector_store %arg14[%c0_58, %c0_59, %c0_60], %136 {strides = array<i32>} : memref<1x5x32xf32, #tpu.memory_space<vmem>>, vector<1x5x32xf32>,
    return
  }
  func.func @transform_0(%arg0: i32) -> (i32, i32, i32) {
    %c0_i32 = arith.constant 0 : i32
    %c0_i32_0 = arith.constant 0 : i32
    %c0_i32_1 = arith.constant 0 : i32
    return %arg0, %c0_i32, %c0_i32_0 : i32, i32, i32
  }
  func.func @transform_1(%arg0: i32) -> (i32, i32) {
    %c0_i32 = arith.constant 0 : i32
    %c0_i32_0 = arith.constant 0 : i32
    %c0_i32_1 = arith.constant 0 : i32
    return %c0_i32, %c0_i32_0 : i32, i32
  }
  func.func @transform_2(%arg0: i32) -> (i32, i32) {
    %c0_i32 = arith.constant 0 : i32
    %c0_i32_0 = arith.constant 0 : i32
    %c0_i32_1 = arith.constant 0 : i32
    return %c0_i32, %c0_i32_0 : i32, i32
  }
  func.func @transform_3(%arg0: i32) -> (i32, i32) {
    %c0_i32 = arith.constant 0 : i32
    %c0_i32_0 = arith.constant 0 : i32
    %c0_i32_1 = arith.constant 0 : i32
    return %c0_i32, %c0_i32_0 : i32, i32
  }
  func.func @transform_4(%arg0: i32) -> (i32, i32) {
    %c0_i32 = arith.constant 0 : i32
    %c0_i32_0 = arith.constant 0 : i32
    %c0_i32_1 = arith.constant 0 : i32
    return %c0_i32, %c0_i32_0 : i32, i32
  }
  func.func @transform_5(%arg0: i32) -> (i32, i32) {
    %c0_i32 = arith.constant 0 : i32
    %c0_i32_0 = arith.constant 0 : i32
    %c0_i32_1 = arith.constant 0 : i32
    return %c0_i32, %c0_i32_0 : i32, i32
  }
  func.func @transform_6(%arg0: i32) -> (i32, i32) {
    %c0_i32 = arith.constant 0 : i32
    %c0_i32_0 = arith.constant 0 : i32
    %c0_i32_1 = arith.constant 0 : i32
    return %c0_i32, %c0_i32_0 : i32, i32
  }
  func.func @transform_7(%arg0: i32) -> (i32, i32) {
    %c0_i32 = arith.constant 0 : i32
    %c0_i32_0 = arith.constant 0 : i32
    %c0_i32_1 = arith.constant 0 : i32
    return %c0_i32, %c0_i32_0 : i32, i32
  }
  func.func @transform_8(%arg0: i32) -> (i32, i32) {
    %c0_i32 = arith.constant 0 : i32
    %c0_i32_0 = arith.constant 0 : i32
    %c0_i32_1 = arith.constant 0 : i32
    return %c0_i32, %c0_i32_0 : i32, i32
  }
  func.func @transform_9(%arg0: i32) -> (i32, i32) {
    %c0_i32 = arith.constant 0 : i32
    %c0_i32_0 = arith.constant 0 : i32
    %c0_i32_1 = arith.constant 0 : i32
    return %c0_i32, %c0_i32_0 : i32, i32
  }
  func.func @transform_10(%arg0: i32) -> (i32, i32) {
    %c0_i32 = arith.constant 0 : i32
    %c0_i32_0 = arith.constant 0 : i32
    %c0_i32_1 = arith.constant 0 : i32
    return %c0_i32, %c0_i32_0 : i32, i32
  }
  func.func @transform_11(%arg0: i32) -> (i32, i32) {
    %c0_i32 = arith.constant 0 : i32
    %c0_i32_0 = arith.constant 0 : i32
    %c0_i32_1 = arith.constant 0 : i32
    return %c0_i32, %c0_i32_0 : i32, i32
  }
  func.func @transform_12(%arg0: i32) -> (i32, i32) {
    %c0_i32 = arith.constant 0 : i32
    %c0_i32_0 = arith.constant 0 : i32
    %c0_i32_1 = arith.constant 0 : i32
    return %c0_i32, %c0_i32_0 : i32, i32
  }
  func.func @transform_13(%arg0: i32) -> (i32, i32, i32) {
    %c0_i32 = arith.constant 0 : i32
    %c0_i32_0 = arith.constant 0 : i32
    %c0_i32_1 = arith.constant 0 : i32
    return %arg0, %c0_i32, %c0_i32_0 : i32, i32, i32
  }
}

</mosaic_0001>

<bundles_post_ra>
// kernel: dino_depther_forward.5
= control target key start
LH: loop header
LB: loop body
LE: loop exit
PB: predicated region body
PF: predicated region fallthrough
CT: control target
= control target key end

     0   :  { %s320_s12 = smov 0   ;;  %s343_s0 = inlined_call_operand.vmem [shape: f32[2,3,784], index: 0, kind: input, shape index: {}]   ;;  %s344_s1 = inlined_call_operand.vmem [shape: f32[1,3,1], index: 1, kind: input, shape index: {}]   ;;  %s345_s2 = inlined_call_operand.vmem [shape: f32[1,3,1], index: 2, kind: input, shape index: {}]   ;;  %s346_s3 = inlined_call_operand.vmem [shape: f32[2,3,784], index: 3, kind: output, shape index: {}]  }
   0x1 LB: > { %s269_s13 = sadd.s32 4294967295, %s296_s12   ;;  %p273_p0 = scmp.ge.s32.totalorder %s296_s12, 1  ;;  %s296_s12 = sphi %s320_s12, %s13_s12  }
   0x2   : > { %p137_p1 = scmp.lt.s32.totalorder %s296_s12, 3 }
   0x4   : > { %p138_p2 = pnand %p273_p0, %p137_p1 }
   0x5   : > { %v175_v0 = vld [vmem:[%s344_s1] sm:$0x7] (!%p138_p2)  ;;  %v298_v1 = vmov (!%p138_p2), 0   ;;  %p161_p3 = scmp.lt.s32.totalorder (!%p138_p2), %s269_s13, 1  ;;  %v299_v3 = vmov (!%p138_p2), 839922192   ;;  %v183_v5 = vlaneseq (!%p138_p2) }
   0x6   : > { %141 = sbr.rel (%p138_p2) target bundleno = 145 (0x91), region = 32  ;;  %289 = vset.pattern.permute.xlu0 (!%p138_p2), %v298_v1  ;;  %v192_v2 = vld [vmem:[%s345_s2] sm:$0x7] (!%p138_p2)  ;;  %v181_v4 = vunpack.c.l.s4 (!%p138_p2), %v299_v3  ;;  %vm212_vm0 = vcmask (!%p138_p2), 124928  }
   0x7   : > { %178 = vperm.xlu0 (!%p138_p2), %289, %v175_v0   ;;  %v184_v7 = vshrl.u32 (!%p138_p2), %v183_v5, 7 }
   0x8   : > { %v182_v6 = vunpack.c.0.s8 (!%p138_p2), %v181_v4 }
   0xa   : > { %v185_v8 = vsub.s32 (!%p138_p2), %v182_v6, %v184_v7 }
   0xb   : > { %195 = vperm.xlu0 (!%p138_p2), %289, %v192_v2  }
   0xd   : > { %s348_s13 = smov (!%p161_p3, %s269_s13), 1 }
   0xe   : > { %s278_s18 = smul.u32 28, %s348_s13 }
  0x10   : > { %s165_s21 = scalar_lea.vmem %s343_s0, %s278_s18  ;;  %s170_s24 = scalar_lea.vmem %s346_s3, %s278_s18 }
  0x11   : > { %v171_v10 = vld [vmem:[%s165_s21] sm:$0x77]  ;;  %v172_v12 = vld [vmem:[%s165_s21 + $0x8] sm:$0x77]  ;;  %v173_v13 = vld [vmem:[%s165_s21 + $0x10] sm:$0x77] }
  0x12   : > { %v174_v14 = vld [vmem:[%s165_s21 + $0x18] sm:$0x7] }
  0x86   : > { %v179_v9 = vpop.permute.xlu0 %178 }
  0x87   : > { %v186_v11 = vrot.slane %v179_v9, %v185_v8 }
  0x89   : > { %v188_v15 = vmul.f32 %v186_v11, %v171_v10  ;;  %v189_v17 = vmul.f32 %v186_v11, %v172_v12  ;;  %v190_v18 = vmul.f32 %v186_v11, %v173_v13  ;;  %v191_v19 = vmul.f32 %v186_v11, %v174_v14 }
  0x8a   : > { %v196_v16 = vpop.permute.xlu0 %195 }
  0x8b   : > { %v203_v20 = vrot.slane %v196_v16, %v185_v8 }
  0x8d   : > { %v205_v21 = vadd.f32 %v203_v20, %v188_v15  ;;  %v206_v22 = vadd.f32 %v203_v20, %v189_v17  ;;  %v207_v23 = vadd.f32 %v203_v20, %v190_v18  ;;  %v208_v24 = vadd.f32 %v203_v20, %v191_v19 }
  0x8f   : > { %209 = vst [vmem:[%s170_s24] sm:$0x77] %v205_v21  ;;  %210 = vst [vmem:[%s170_s24 + $0x8] sm:$0x77] %v206_v22 }
  0x90   : > { %211 = vst [vmem:[%s170_s24 + $0x10] sm:$0x77] %v207_v23  ;;  %213 = vst.msk [vmem:[%s170_s24 + $0x18] sm:$0x7] %vm212_vm0, %v208_v24 }
  0x91 PF: > { %s13_s12 = sadd.s32 1, %s296_s12  }
  0x92   : > { %p10_p4 = scmp.ge.s32.totalorder %s13_s12, 4  }
  0x94   :  { %12 = sbr.rel (!%p10_p4) target bundleno = 1 (0x1), region = 62 }

// kernel: dino_depther_forward.6
= control target key start
LH: loop header
LB: loop body
LE: loop exit
PB: predicated region body
PF: predicated region fallthrough
CT: control target
= control target key end

     0   :  { %10 = vsyncpa [#allocation3], 0  ;;  %s1661_s0 = inlined_call_operand.hbm [shape: f32[2,4,588], index: 0, kind: input, shape index: {}]   ;;  %s1662_s1 = inlined_call_operand.hbm [shape: bf16[588,32], index: 1, kind: input, shape index: {}]   ;;  %s1663_s2 = inlined_call_operand.hbm [shape: f32[1,32], index: 2, kind: input, shape index: {}]   ;;  %s1664_s3 = inlined_call_operand.hbm [shape: f32[1,32], index: 3, kind: input, shape index: {}]   ;;  %s1665_s4 = inlined_call_operand.hbm [shape: f32[4,32], index: 4, kind: input, shape index: {}]   ;;  %s1666_s5 = inlined_call_operand.hbm [shape: f32[2,5,32], index: 5, kind: output, shape index: {}]  }
   0x1   :  { %12 = vsyncpa [#allocation3 + $0x1], 0 }
   0x2   :  { %13 = vsyncpa [#allocation6], 0 }
   0x3   :  { %14 = vsyncpa [#allocation9], 0 }
   0x4   :  { %15 = vsyncpa [#allocation4], 0 }
   0x5   :  { %17 = vsyncpa [#allocation4 + $0x1], 0  ;;  %s1379_s18 = smov 0   ;;  %s1381_s19 = smov 0  }
   0x6   :  { %s1383_s20 = smov 0   ;;  %s1385_s21 = smov 0  }
   0x7 LB: > { %s1339_s22 = smov [#allocation5]   ;;  %s1400_s24 = sadd.s32 4294967295, %s1337_s21   ;;  %s1337_s21 = sphi %s1385_s21, %s1689_s21   ;;  %s1333_s20 = sphi %s1383_s20, %s1688_s20   ;;  %s1329_s19 = sphi %s1381_s19, %s1687_s19   ;;  %s1325_s18 = sphi %s1379_s18, %s1686_s18  }
   0x8   : > { %s176_s23 = sshll.u32 %s1339_s22, 4  ;;  %p868_p0 = scmp.ge.s32.totalorder %s1337_s21, 1  ;;  %s1405_s23 = int_to_ptr.vmem [resolvable:$true] %s176_s23 }
   0x9   : > { %p1667_p1 = scmp.eq.s32.totalorder %s1400_s24, 0  ;;  %p164_p2 = scmp.lt.s32.totalorder %s1337_s21, 3 }
   0xa   : > { %s1340_s26 = smov [#allocation8]   ;;  %s1341_s29 = smov [#allocation7]  }
   0xb   : > { %p1407_p3 = pnand %p868_p0, %p164_p2  ;;  %s201_s27 = sshll.u32 %s1340_s26, 4  ;;  %s1420_s27 = int_to_ptr.vmem [resolvable:$true] %s201_s27 }
   0xc   : > { %s190_s30 = sshll.u32 %s1341_s29, 4  ;;  %s1121_s8 = scalar_lea.hbm %s1662_s1, 4736  ;;  %s1422_s30 = int_to_ptr.vmem [resolvable:$true] %s190_s30 }
   0xd   : > { %s1670_s25 = scalar_select %p1407_p3, 1, 0 }
   0xe   : > { %p1011_p5 = pneg %p1407_p3  ;;  %p1122_p7 = scmp.ne.s32.totalorder %s1662_s1, %s1121_s8 }
   0xf   : > { %p1128_p11 = scmp.lt.u32.totalorder %s1121_s8, %s1662_s1 }
  0x10   : > { %p1416_p6 = pnand %p1011_p5, %p1667_p1 }
  0x12   : > { %p1432_p8 = pneg %p1416_p6 }
  0x14   : > { %p1124_p9 = pnand %p1432_p8, %p1122_p7 }
  0x16   : > { %p1125_p10 = pneg %p1124_p9 }
  0x18   : > { %p1130_p12 = pnand %p1128_p11, %p1125_p10 }
  0x1a   : > { %1133 = shalt.err (!%p1130_p12)
}
  0x1b   : > { %s1134_s14 = scalar_lea.vmem %s1405_s23, 4736  ;;  %p1142_p5 = scmp.lt.s32.totalorder %s1405_s23, %s1405_s23 }
  0x1c   : > { %p1135_p13 = scmp.ne.s32.totalorder %s1405_s23, %s1134_s14  ;;  %p1143_p4 = scmp.lt.s32.totalorder %s1134_s14, %s1134_s14 }
  0x1e   : > { %p1137_p0 = pnand %p1135_p13, %p1432_p8  ;;  %p1144_p7 = por %p1143_p4, %p1142_p5 }
  0x20   : > { %p1138_p2 = pneg %p1137_p0 }
  0x22   : > { %p1145_p9 = pnand %p1144_p7, %p1138_p2 }
  0x24   : > { %1148 = shalt.err (!%p1145_p9)
}
  0x25   : > { %s1342_s15 = smov 64   ;;  %s1343_s16 = smov 4  }
  0x26   : > { %1014 = dma.hbm_to_vmem [thread:$0]  (!%p1416_p6), %s1662_s1, 4736, %s1405_s23, [#allocation6], %s1342_s15, %s1342_s15, %s1343_s16  }
  0x27   : > { %s1149_s6 = scalar_lea.hbm %s1664_s3, 16 }
  0x28   : > { %p1150_p4 = scmp.ne.s32.totalorder %s1664_s3, %s1149_s6  ;;  %p1156_p12 = scmp.lt.u32.totalorder %s1149_s6, %s1664_s3 }
  0x2a   : > { %p1152_p10 = pnand %p1150_p4, %p1432_p8 }
  0x2c   : > { %p1153_p11 = pneg %p1152_p10 }
  0x2e   : > { %p1158_p13 = pnand %p1156_p12, %p1153_p11 }
  0x30   : > { %1161 = shalt.err (!%p1158_p13)
}
  0x31   : > { %s1162_s23 = scalar_lea.vmem %s1420_s27, 16  ;;  %s1169_s12 = scalar_lea.vmem %s1420_s27, 32 }
  0x32   : > { %p1163_p0 = scmp.ne.s32.totalorder %s1420_s27, %s1162_s23  ;;  %p1170_p7 = scmp.lt.s32.totalorder %s1420_s27, %s1420_s27 }
  0x33   : > { %p1171_p9 = scmp.lt.s32.totalorder %s1169_s12, %s1162_s23 }
  0x34   : > { %p1165_p2 = pnand %p1163_p0, %p1432_p8 }
  0x35   : > { %p1172_p4 = por %p1171_p9, %p1170_p7 }
  0x36   : > { %p1166_p5 = pneg %p1165_p2 }
  0x38   : > { %p1173_p10 = pnand %p1172_p4, %p1166_p5 }
  0x3a   : > { %1176 = shalt.err (!%p1173_p10)
}
  0x3b   : > { %1020 = dma.hbm_to_vmem [thread:$0]  (!%p1416_p6), %s1664_s3, 16, %s1420_s27, [#allocation9]  }
  0x3c   : > { %s1177_s17 = scalar_lea.hbm %s1663_s2, 16 }
  0x3d   : > { %p1178_p11 = scmp.ne.s32.totalorder %s1663_s2, %s1177_s17  ;;  %p1184_p0 = scmp.lt.u32.totalorder %s1177_s17, %s1663_s2 }
  0x3f   : > { %p1180_p12 = pnand %p1178_p11, %p1432_p8 }
  0x41   : > { %p1181_p13 = pneg %p1180_p12 }
  0x43   : > { %p1186_p2 = pnand %p1184_p0, %p1181_p13 }
  0x45   : > { %1189 = shalt.err (!%p1186_p2)
}
  0x46   : > { %s1190_s27 = scalar_lea.vmem %s1422_s30, 16  ;;  %s1197_s7 = scalar_lea.vmem %s1422_s30, 32 }
  0x47   : > { %p1191_p5 = scmp.ne.s32.totalorder %s1422_s30, %s1190_s27  ;;  %p1198_p4 = scmp.lt.s32.totalorder %s1422_s30, %s1422_s30 }
  0x48   : > { %p1199_p10 = scmp.lt.s32.totalorder %s1197_s7, %s1190_s27 }
  0x49   : > { %p1193_p7 = pnand %p1191_p5, %p1432_p8 }
  0x4a   : > { %p1200_p11 = por %p1199_p10, %p1198_p4 }
  0x4b   : > { %p1194_p9 = pneg %p1193_p7 }
  0x4d   : > { %p1201_p12 = pnand %p1200_p11, %p1194_p9 }
  0x4f   : > { %1204 = shalt.err (!%p1201_p12)
}
  0x50   : > { %1017 = dma.hbm_to_vmem [thread:$0]  (!%p1416_p6), %s1663_s2, 16, %s1422_s30, [#allocation6]  }
  0x51   : > { %s1344_s10 = smov [#allocation10]   ;;  %s1205_s14 = scalar_lea.hbm %s1665_s4, 64 }
  0x52   : > { %s212_s23 = sshll.u32 %s1344_s10, 4  ;;  %p1206_p13 = scmp.ne.s32.totalorder %s1665_s4, %s1205_s14  ;;  %s213_s23 = int_to_ptr.vmem [resolvable:$true] %s212_s23 }
  0x53   : > { %p1212_p5 = scmp.lt.u32.totalorder %s1205_s14, %s1665_s4 }
  0x54   : > { %p1208_p0 = pnand %p1206_p13, %p1432_p8 }
  0x56   : > { %p1209_p2 = pneg %p1208_p0 }
  0x58   : > { %p1214_p7 = pnand %p1212_p5, %p1209_p2 }
  0x5a   : > { %1217 = shalt.err (!%p1214_p7)
}
  0x5b   : > { %s1218_s30 = scalar_lea.vmem %s213_s23, 64  ;;  %p1226_p11 = scmp.lt.s32.totalorder %s213_s23, %s213_s23 }
  0x5c   : > { %p1219_p9 = scmp.ne.s32.totalorder %s213_s23, %s1218_s30  ;;  %p1227_p12 = scmp.lt.s32.totalorder %s1218_s30, %s1218_s30 }
  0x5e   : > { %p1221_p4 = pnand %p1219_p9, %p1432_p8  ;;  %p1228_p1 = por %p1227_p12, %p1226_p11 }
  0x60   : > { %p1222_p10 = pneg %p1221_p4 }
  0x62   : > { %p1229_p3 = pnand %p1228_p1, %p1222_p10 }
  0x64   : > { %1232 = shalt.err (!%p1229_p3)
}
  0x65   : > { %1023 = dma.hbm_to_vmem [thread:$0]  (!%p1416_p6), %s1665_s4, 64, %s213_s23, [#allocation9]  }
  0x66   : > { %s867_s11 = sadd.s32 4294967294, %s1337_s21   ;;  %s1521_s28 = sadd.s32 1, %s1337_s21  }
  0x67   : > { %s27_s6 = ssub.s32 %s1337_s21, %s1521_s28  ;;  %s30_s27 = sadd.s32 1, %s1333_s20 }
  0x68   : > { %p28_p1 = scmp.eq.s32.totalorder %s27_s6, 0  ;;  %p37_p3 = scmp.ne.s32.totalorder %s1333_s20, %s1329_s19 }
  0x69   : > { %p38_p8 = scmp.eq.s32.totalorder %s1337_s21, 0  ;;  %p43_p13 = scmp.ne.s32.totalorder %s1329_s19, %s1325_s18 }
  0x6a   : > { %s1532_s7 = scalar_select %p28_p1, %s1333_s20, %s30_s27  }
  0x6b   : > { %p39_p0 = por %p38_p8, %p37_p3  ;;  %p1673_p2 = scmp.eq.s32.totalorder %s1400_s24, 0 }
  0x6c   : > { %p151_p6 = scmp.eq.s32.totalorder %s1400_s24, 1  ;;  %p157_p7 = scmp.eq.s32.totalorder %s867_s11, 1 }
  0x6d   : > { %p1536_p5 = por %p1673_p2, %p43_p13  ;;  %p1036_p9 = scmp.lt.s32.totalorder %s1337_s21, 2 }
  0x6e   : > { %s223_s9 = sand.u32 1, %s1333_s20   ;;  %p1543_p4 = por %p151_p6, %p37_p3 }
  0x6f   : > { %p1547_p10 = por %p157_p7, %p43_p13  ;;  %s988_s12 = smul.u32 20, %s223_s9 }
  0x70   : > { %s1675_s10 = scalar_select %p1543_p4, 1, 0 }
  0x71   : > { %s1676_s23 = scalar_select %p1547_p10, 1, 0 }
  0x72   : > { %s989_s13 = smul.u32 320, %s1337_s21  ;;  %p1552_p11 = pnand %p1036_p9, %p39_p0 }
  0x73   : > { %s227_s22 = scalar_lea.vmem [#allocation2], %s988_s12  ;;  %s224_s26 = scalar_lea.sflag [#allocation3], %s223_s9 }
  0x74   : > { %s1559_s17 = scalar_lea.hbm %s1661_s0, %s989_s13  ;;  %s235_s30 = sshll.u32 %s227_s22, 4  ;;  %s1561_s30 = int_to_ptr.vmem [resolvable:$true] %s235_s30 }
  0x75   : > { %s1233_s29 = scalar_lea.hbm %s1559_s17, 320  ;;  %p1235_p1 = pneg %p1552_p11 }
  0x76   : > { %p1234_p12 = scmp.ne.s32.totalorder %s1559_s17, %s1233_s29  ;;  %s1238_s27 = scalar_lea.hbm %s1661_s0, 640 }
  0x77   : > { %p1239_p13 = scmp.lt.u32.totalorder %s1559_s17, %s1661_s0  ;;  %p1240_p0 = scmp.lt.u32.totalorder %s1238_s27, %s1233_s29 }
  0x78   : > { %p1236_p3 = pnand %p1235_p1, %p1234_p12  ;;  %p1242_p6 = scmp.lt.u32.totalorder %s1233_s29, %s1559_s17 }
  0x79   : > { %p1241_p2 = por %p1240_p0, %p1239_p13 }
  0x7a   : > { %p1237_p8 = pneg %p1236_p3 }
  0x7b   : > { %p1243_p7 = por %p1242_p6, %p1241_p2 }
  0x7d   : > { %p1244_p9 = pnand %p1243_p7, %p1237_p8 }
  0x7f   : > { %1247 = shalt.err (!%p1244_p9)
}
  0x80   : > { %s1248_s9 = scalar_lea.vmem %s1561_s30, 320  ;;  %s1345_s12 = smov [#allocation2]  }
  0x81   : > { %p1249_p12 = scmp.ne.s32.totalorder %s1561_s30, %s1248_s9  ;;  %s1253_s16 = sshll.u32 %s1345_s12, 4  ;;  %s1254_s16 = int_to_ptr.vmem [resolvable:$false] %s1253_s16 }
  0x82   : > { %s1255_s22 = scalar_lea.vmem %s1254_s16, 640  ;;  %p1256_p4 = scmp.lt.s32.totalorder %s1561_s30, %s1254_s16 }
  0x83   : > { %p1251_p3 = pnand %p1249_p12, %p1235_p1  ;;  %p1257_p13 = scmp.lt.s32.totalorder %s1255_s22, %s1248_s9 }
  0x85   : > { %p1252_p10 = pneg %p1251_p3  ;;  %p1258_p0 = por %p1257_p13, %p1256_p4 }
  0x87   : > { %p1259_p2 = pnand %p1258_p0, %p1252_p10 }
  0x89   : > { %1262 = shalt.err (!%p1259_p2)
}
  0x8a   : > { %1027 = dma.hbm_to_vmem [thread:$0]  (!%p1552_p11), %s1559_s17, 320, %s1561_s30, %s224_s26  }
  0x8b   : > { %p1678_p8 = scmp.ne.s32.totalorder %s1670_s25, 0 }
  0x8c   : > { %s1591_s29 = sand.u32 (!%p1678_p8), 1, %s1329_s19  }
  0x8d   : > { %244 = sbr.rel (%p1678_p8) target bundleno = 438 (0x1b6), region = 40  ;;  %s247_s6 = scalar_lea.sflag (!%p1678_p8), [#allocation3], %s1591_s29 }
  0x8e   : > { %s990_s11 = smul.u32 (!%p1678_p8), 20, %s1591_s29 }
  0x90   : > { %s1595_s27 = scalar_lea.vmem (!%p1678_p8), [#allocation2], %s990_s11 }
  0x94   : > { %1308 = dma.done.wait (%p1536_p5), %s247_s6, 320  }
  0x95   : > { %1310 = vsyncadd (%p1536_p5), %s247_s6, 4294966976  ;;  %p1679_p4 = scmp.eq.s32.totalorder %s1400_s24, 0 }
  0x97   : > { %1312 = dma.done.wait (%p1679_p4), [#allocation6], 4752   ;;  %p1680_p10 = pmov %p1679_p4 }
  0x98   : > { %p1681_p11 = pmov %p1679_p4 }
  0x99   : > { %1314 = vsyncadd (%p1680_p10), [#allocation6], 4294962544 }
  0x9a   : > { %1316 = dma.done.wait (%p1681_p11), [#allocation9], 80   ;;  %p1682_p1 = pmov %p1679_p4 }
  0x9b   : > { %v1082_v0 = vld [vmem:[#allocation5 + $0x40] sm:$0xff]   ;;  %v1086_v4 = vld [vmem:[#allocation5 + $0x48] sm:$0xff]   ;;  %v1090_v8 = vld [vmem:[#allocation5 + $0x50] sm:$0xff]   ;;  %v1346_v34 = vmov 0.0   ;;  %vm1347_vm0 = vmmov 0   ;;  %vm614_vm1 = vcmask 1045504  }
  0x9c   : > { %1318 = vsyncadd (%p1682_p1), [#allocation9], 4294967216  ;;  %v1083_v1 = vld [vmem:[#allocation5] sm:$0xff]   ;;  %924 = vmatprep.subr.bf16.mxu0 %v1082_v0  ;;  %v1087_v5 = vld [vmem:[#allocation5 + $0x8] sm:$0xff]   ;;  %vm610_vm2 = vcmask 621568   ;;  %s880_s25 = sshll.u32 %s1591_s29, 3 }
  0x9d   : > { %v1084_v2 = vld [vmem:[#allocation5 + $0xc0] sm:$0xff]   ;;  %925 = vmatpush3.bf16.msra.mxu0 %v1083_v1  ;;  %v1088_v6 = vld [vmem:[#allocation5 + $0xc8] sm:$0xff]   ;;  %v1091_v9 = vld [vmem:[#allocation5 + $0x10] sm:$0xff]   ;;  %vm741_vm3 = vcmask 253952   ;;  %s292_s8 = scalar_lea.vmem [#allocation11], %s880_s25  ;;  %s921_s14 = sshll.u32 %s1400_s24, 7 }
  0x9e   : > { %v1085_v3 = vld [vmem:[#allocation5 + $0x80] sm:$0xff]   ;;  %946 = vmatprep.subr.bf16.mxu1 %v1084_v2  ;;  %926 = vmatprep.subr.bf16.mxu0 %v1086_v4  ;;  %v1089_v7 = vld [vmem:[#allocation5 + $0x88] sm:$0xff]   ;;  %v1092_v10 = vld [vmem:[#allocation5 + $0xd0] sm:$0xff]   ;;  %s759_s17 = sshll.u32 %s292_s8, 4  ;;  %vm743_vm4 = vcmask 257024   ;;  %s1617_s13 = scalar_lea.hbm %s1666_s5, %s921_s14  ;;  %s1619_s17 = int_to_ptr.vmem [resolvable:$true] %s759_s17 }
  0x9f   : > { %947 = vmatpush3.bf16.msra.mxu1 %v1085_v3  ;;  %v1093_v11 = vld [vmem:[#allocation5 + $0x90] sm:$0xff]   ;;  %v1094_v12 = vld [vmem:[#allocation5 + $0x58] sm:$0xff]   ;;  %v1098_v16 = vld [vmem:[#allocation5 + $0x60] sm:$0xff]   ;;  %s746_s15 = scalar_lea.sflag [#allocation4], %s1591_s29  ;;  %s1263_s24 = scalar_lea.vmem %s1619_s17, 128 }
  0xa0   : > { %948 = vmatprep.subr.bf16.mxu1 %v1088_v6  ;;  %v1095_v13 = vld [vmem:[#allocation5 + $0x18] sm:$0xff]   ;;  %v1099_v17 = vld [vmem:[#allocation5 + $0x20] sm:$0xff]   ;;  %v1102_v20 = vld [vmem:[#allocation5 + $0x68] sm:$0xff]   ;;  %p1264_p5 = scmp.ne.s32.totalorder %s1619_s17, %s1263_s24  ;;  %p1683_p6 = scmp.ne.s32.totalorder %s1675_s10, 0 }
  0xa1   : > { %927 = vmatpush3.bf16.msra.mxu0 %v1087_v5  ;;  %v1096_v14 = vld [vmem:[#allocation5 + $0xd8] sm:$0xff]   ;;  %v1100_v18 = vld [vmem:[#allocation5 + $0xe0] sm:$0xff]   ;;  %v1103_v21 = vld [vmem:[#allocation5 + $0x28] sm:$0xff]   ;;  %s1348_s9 = smov [#allocation11]  }
  0xa2   : > { %928 = vmatprep.subr.bf16.mxu0 %v1090_v8  ;;  %v1097_v15 = vld [vmem:[#allocation5 + $0x98] sm:$0xff]   ;;  %v1101_v19 = vld [vmem:[#allocation5 + $0xa0] sm:$0xff]   ;;  %v1104_v22 = vld [vmem:[#allocation5 + $0xe8] sm:$0xff]   ;;  %p1265_p7 = pnand %p1264_p5, %p1683_p6  ;;  %s1267_s12 = sshll.u32 %s1348_s9, 4  ;;  %s1268_s12 = int_to_ptr.vmem [resolvable:$false] %s1267_s12 }
  0xa3   : > { %949 = vmatpush3.bf16.msra.mxu1 %v1089_v7  ;;  %v1105_v23 = vld [vmem:[#allocation5 + $0xa8] sm:$0xff]   ;;  %v1106_v24 = vld [vmem:[#allocation5 + $0x70] sm:$0xff]   ;;  %v1110_v28 = vld [vmem:[#allocation5 + $0x78] sm:$0xff]   ;;  %s1269_s16 = scalar_lea.vmem %s1268_s12, 256  ;;  %p1270_p12 = scmp.lt.s32.totalorder %s1619_s17, %s1268_s12 }
  0xa4   : > { %950 = vmatprep.subr.bf16.mxu1 %v1092_v10  ;;  %v1107_v25 = vld [vmem:[#allocation5 + $0x30] sm:$0xff]   ;;  %v1111_v29 = vld [vmem:[#allocation5 + $0x38] sm:$0xff]   ;;  %v1116_v40 = vld [vmem:[#allocation5 + $0x100] sm:$0xff]   ;;  %p1266_p9 = pneg %p1265_p7  ;;  %p1271_p3 = scmp.lt.s32.totalorder %s1269_s16, %s1263_s24 }
  0xa5   : > { %929 = vmatpush3.bf16.msra.mxu0 %v1091_v9  ;;  %v1108_v26 = vld [vmem:[#allocation5 + $0xf0] sm:$0xff]   ;;  %v1112_v30 = vld [vmem:[#allocation5 + $0xf8] sm:$0xff]   ;;  %v1117_v42 = vld [vmem:[#allocation5 + $0x108] sm:$0xff]  }
  0xa6   : > { %930 = vmatprep.subr.bf16.mxu0 %v1094_v12  ;;  %v1109_v27 = vld [vmem:[#allocation5 + $0xb0] sm:$0xff]   ;;  %v1114_v33 = vld [vmem:[#allocation5 + $0xb8] sm:$0xff]   ;;  %v1120_v45 = vld [vmem:[#allocation5 + $0x120] sm:$0x3f]   ;;  %p1272_p13 = por %p1271_p3, %p1270_p12 }
  0xa7   : > { %951 = vmatpush3.bf16.msra.mxu1 %v1093_v11  ;;  %v294_v31 = vld [vmem:[%s1595_s27] sm:$0xff]  ;;  %v295_v35 = vld [vmem:[%s1595_s27 + $0x8] sm:$0xff]  ;;  %v296_v46 = vld [vmem:[%s1595_s27 + $0x10] sm:$0xf]  ;;  %v616_v47 = vsel %vm614_vm1, %v1120_v45, 0 }
  0xa8   : > { %952 = vmatprep.subr.bf16.mxu1 %v1096_v14  ;;  %v373_v32 = vcombine.high %v294_v31, %v294_v31  ;;  %v377_v36 = vpack.c.bf16 %v294_v31, %v294_v31  ;;  %v374_v37 = vcombine.high %v295_v35, %v295_v35  ;;  %v379_v39 = vpack.c.bf16 %v295_v35, %v295_v35  ;;  %v1118_v43 = vld [vmem:[#allocation5 + $0x110] sm:$0xff]   ;;  %v1119_v44 = vld [vmem:[#allocation5 + $0x118] sm:$0xff]   ;;  %v740_v49 = vld [vmem:[#allocation8] sm:$0x1]  ;;  %p1273_p0 = pnand %p1272_p13, %p1266_p9 }
  0xa9   : > { %931 = vmatpush3.bf16.msra.mxu0 %v1095_v13  ;;  %v381_v48 = vpack.c.bf16 %v296_v46, %v296_v46  ;;  %742 = vst.msk [vmem:[%s292_s8] sm:$0x1] %vm741_vm3, %v740_v49  ;;  %v881_v51 = vld [vmem:[#allocation7] ss:$0 sm:$0xff]  ;;  %v738_v0 = vld [vmem:[#allocation10] sm:$0xf] }
  0xaa   : > { %932 = vmatprep.subr.bf16.mxu0 %v1098_v16  ;;  %v378_v38 = vpack.c.bf16 %v373_v32, %v373_v32  ;;  %v380_v41 = vpack.c.bf16 %v374_v37, %v374_v37 }
  0xab   : > { %953 = vmatpush3.bf16.msra.mxu1 %v1097_v15 }
  0xac   : > { %954 = vmatprep.subr.bf16.mxu1 %v1100_v18  ;;  %650 = vmatprep.mubr.bf16.mxu0 %v378_v38 }
  0xad   : > { %933 = vmatpush3.bf16.msra.mxu0 %v1099_v17  ;;  %690 = vmatprep.mubr.bf16.mxu1 %v380_v41 }
  0xae   : > { %934 = vmatprep.subr.bf16.mxu0 %v1102_v20 }
  0xaf   : > { %955 = vmatpush3.bf16.msra.mxu1 %v1101_v19 }
  0xb0   : > { %956 = vmatprep.subr.bf16.mxu1 %v1104_v22 }
  0xb1   : > { %935 = vmatpush3.bf16.msra.mxu0 %v1103_v21 }
  0xb2   : > { %936 = vmatprep.subr.bf16.mxu0 %v1106_v24 }
  0xb3   : > { %957 = vmatpush3.bf16.msra.mxu1 %v1105_v23 }
  0xb4   : > { %958 = vmatprep.subr.bf16.mxu1 %v1108_v26 }
  0xb5   : > { %937 = vmatpush3.bf16.msra.mxu0 %v1107_v25 }
  0xb6   : > { %938 = vmatprep.subr.bf16.mxu0 %v1110_v28 }
  0xb7   : > { %959 = vmatpush3.bf16.msra.mxu1 %v1109_v27 }
  0xb8   : > { %960 = vmatprep.subr.bf16.mxu1 %v1112_v30 }
  0xb9   : > { %939 = vmatpush3.bf16.msra.mxu0 %v1111_v29 }
  0xba   : > { %974 = vmatprep.subr.bf16.mxu0 %v1346_v34 }
  0xbb   : > { %961 = vmatpush3.bf16.msra.mxu1 %v1114_v33 }
  0xbc   : > { %651 = vmatmul.mubr.bf16.vlgmr.msra.gmra.mrb[0].mxu0 %v377_v36 }
  0xbd   : > { %975 = vmatpush3.bf16.msra.mxu0 %v1116_v40  ;;  %984 = vmatprep.mubr.msk.bf16.mxu0 %vm1347_vm0, %v1346_v34 }
  0xbe   : > { %691 = vmatmul.mubr.bf16.vlgmr.msra.gmra.mrb[0].mxu1 %v379_v39  ;;  %976 = vmatprep.subr.bf16.mxu0 %v1346_v34 }
  0xc1   : > { %977 = vmatpush3.bf16.msra.mxu0 %v1117_v42 }
  0xc2   : > { %978 = vmatprep.subr.bf16.mxu0 %v1346_v34 }
  0xc5   : > { %979 = vmatpush3.bf16.msra.mxu0 %v1118_v43 }
  0xc6   : > { %980 = vmatprep.subr.bf16.mxu0 %v1346_v34 }
  0xc9   : > { %981 = vmatpush3.bf16.msra.mxu0 %v1119_v44 }
  0xca   : > { %982 = vmatprep.subr.bf16.mxu0 %v1346_v34 }
  0xcd   : > { %983 = vmatpush3.bf16.msra.mxu0 %v616_v47 }
  0xd0   : > { %985 = vmatmul.mubr.msk.bf16.vlgmr.msra.gmra.mrb[4].mxu0 %vm610_vm2, %v381_v48 }
 0x18f   : > { %v940_v50 = vpop.f32.mrb[0].mxu0 }
 0x190   : > { %v941_v52 = vpop.f32.mrb[1].mxu0 }
 0x191   : > { %v962_v53 = vpop.f32.mrb[0].mxu1  ;;  %v942_v54 = vadd.f32 %v941_v52, %v940_v50  ;;  %v943_v55 = vpop.f32.mrb[2].mxu0 }
 0x192   : > { %v963_v56 = vpop.f32.mrb[1].mxu1  ;;  %v944_v57 = vpop.f32.mrb[3].mxu0 }
 0x193   : > { %v964_v58 = vadd.f32 %v963_v56, %v962_v53  ;;  %v965_v59 = vpop.f32.mrb[2].mxu1  ;;  %v653_v60 = vadd.f32 %v942_v54, %v881_v51 }
 0x194   : > { %v966_v61 = vpop.f32.mrb[3].mxu1 }
 0x195   : > { %v693_v62 = vadd.f32 %v964_v58, %v653_v60 }
 0x1a3   : > { %v732_v63 = vpop.f32.mrb[4].mxu0 }
 0x1a4   : > { %v733_v1 = vadd.f32 %v732_v63, %v693_v62  ;;  %v986_v2 = vpop.f32.mrb[5].mxu0 }
 0x1a5   : > { %v735_v3 = vpop.f32.mrb[6].mxu0 }
 0x1a6   : > { %v739_v4 = vadd.f32 %v738_v0, %v733_v1  ;;  %v987_v5 = vpop.f32.mrb[7].mxu0 }
 0x1a8   : > { %744 = vst.msk [vmem:[%s292_s8 + $0x1] sm:$0xf] %vm743_vm4, %v739_v4 }
 0x1a9   : > { %1276 = shalt.err (!%p1273_p0)
}
 0x1aa   : > { %s1277_s22 = scalar_lea.hbm %s1617_s13, 128  ;;  %s1281_s6 = scalar_lea.hbm %s1666_s5, 256 }
 0x1ab   : > { %p1278_p2 = scmp.ne.s32.totalorder %s1617_s13, %s1277_s22  ;;  %p1282_p10 = scmp.lt.u32.totalorder %s1617_s13, %s1666_s5 }
 0x1ac   : > { %p1283_p11 = scmp.lt.u32.totalorder %s1281_s6, %s1277_s22  ;;  %p1285_p5 = scmp.lt.u32.totalorder %s1277_s22, %s1617_s13 }
 0x1ad   : > { %p1279_p8 = pnand %p1278_p2, %p1683_p6 }
 0x1ae   : > { %p1284_p1 = por %p1283_p11, %p1282_p10 }
 0x1af   : > { %p1280_p4 = pneg %p1279_p8 }
 0x1b0   : > { %p1286_p7 = por %p1285_p5, %p1284_p1 }
 0x1b2   : > { %p1287_p9 = pnand %p1286_p7, %p1280_p4 }
 0x1b4   : > { %1290 = shalt.err (!%p1287_p9)
}
 0x1b5   : > { %1009 = dma.vmem_to_hbm [thread:$0]  (%p1683_p6), %s1619_s17, 128, %s1617_s13, %s746_s15  }
 0x1b6 PF: > { %s771_s8 = sand.u32 1, %s1325_s18   ;;  %p1684_p12 = scmp.ne.s32.totalorder %s1676_s23, 0 }
 0x1b7   : > { %p1685_p3 = scmp.ge.s32.totalorder %s1337_s21, 2  ;;  %s772_s14 = scalar_lea.sflag [#allocation4], %s771_s8 }
 0x1b9   : > { %p1029_p13 = pnand %p1685_p3, %p1684_p12 }
 0x1bb   : > { %1320 = dma.done.wait (!%p1029_p13), %s772_s14, 128  }
 0x1bc   : > { %1322 = vsyncadd (!%p1029_p13), %s772_s14, 4294967168  ;;  %p20_p0 = scmp.ge.s32.totalorder %s1521_s28, 4   ;;  %s1686_s18 = smov %s1329_s19 }
 0x1bd   : > { %s1687_s19 = smov %s1333_s20  ;;  %s1688_s20 = smov %s1532_s7 }
 0x1be   : > { %s1689_s21 = smov %s1521_s28  ;;  %22 = sbr.rel (!%p20_p0) target bundleno = 7 (0x7), region = 101 }
 0x1c5   :  { %777 = vsyncpa [#allocation3], 1 }
 0x1c6   :  { %779 = vsyncpa [#allocation3 + $0x1], 1 }
 0x1c7   :  { %780 = vsyncpa [#allocation6], 1 }
 0x1c8   :  { %781 = vsyncpa [#allocation9], 1 }
 0x1c9   :  { %782 = vsyncpa [#allocation4], 1 }
 0x1ca   :  { %784 = vsyncpa [#allocation4 + $0x1], 1 }

// kernel: dino_depther_forward.9
= control target key start
LH: loop header
LB: loop body
LE: loop exit
PB: predicated region body
PF: predicated region fallthrough
CT: control target
= control target key end

     0   :  { %s1336_s0 = inlined_call_operand.hbm [shape: f32[2,5,32], index: 0, kind: input, shape index: {}]   ;;  %s1337_s1 = inlined_call_operand.hbm [shape: f32[1,32], index: 1, kind: input, shape index: {}]   ;;  %s1338_s2 = inlined_call_operand.hbm [shape: f32[1,32], index: 2, kind: input, shape index: {}]   ;;  %s1339_s3 = inlined_call_operand.hbm [shape: f32[1,32], index: 3, kind: input, shape index: {}]   ;;  %s1340_s4 = inlined_call_operand.hbm [shape: f32[1,32], index: 4, kind: input, shape index: {}]   ;;  %s1341_s5 = inlined_call_operand.<no memory space> [shape: f32[1,1], index: 5, kind: input, shape index: {}]   ;;  %s1342_s6 = inlined_call_operand.hbm [shape: f32[2,5,32], index: 6, kind: output, shape index: {0}]   ;;  %s1343_s7 = inlined_call_operand.hbm [shape: f32[2,4,1], index: 7, kind: output, shape index: {1}]  }
   0x1   :  { %v13_v0 = vstv %s1341_s5 }
   0x2   :  { %14 = vst [vmem:[#allocation2] sm:$0x1] %v13_v0 }
   0x3   :  { %15 = vsyncpa [#allocation4], 0 }
   0x4   :  { %17 = vsyncpa [#allocation4 + $0x1], 0 }
   0x5   :  { %18 = vsyncpa [#allocation7], 0 }
   0x6   :  { %19 = vsyncpa [#allocation10], 0 }
   0x7   :  { %20 = vsyncpa [#allocation5], 0 }
   0x8   :  { %22 = vsyncpa [#allocation5 + $0x1], 0 }
   0x9   :  { %23 = vsyncpa [#allocation14], 0 }
   0xa   :  { %25 = vsyncpa [#allocation14 + $0x1], 0  ;;  %s1018_s26 = smov 0   ;;  %s1020_s27 = smov 0  }
   0xb   :  { %s1022_s28 = smov 0   ;;  %s1024_s29 = smov 0  }
   0xc LB: > { %s968_s5 = smov [#allocation6]   ;;  %s1039_s8 = sadd.s32 4294967295, %s966_s29   ;;  %s966_s29 = sphi %s1024_s29, %s1367_s29   ;;  %s962_s28 = sphi %s1022_s28, %s1366_s28   ;;  %s958_s27 = sphi %s1020_s27, %s1365_s27   ;;  %s954_s26 = sphi %s1018_s26, %s1364_s26  }
   0xd   : > { %s232_s30 = sshll.u32 %s968_s5, 4  ;;  %p598_p0 = scmp.ge.s32.totalorder %s966_s29, 1  ;;  %s1044_s30 = int_to_ptr.vmem [resolvable:$true] %s232_s30 }
   0xe   : > { %p1344_p1 = scmp.eq.s32.totalorder %s1039_s8, 0  ;;  %p219_p2 = scmp.lt.s32.totalorder %s966_s29, 3 }
   0xf   : > { %s969_s10 = smov [#allocation9]   ;;  %s970_s12 = smov [#allocation8]  }
  0x10   : > { %p1046_p3 = pnand %p598_p0, %p219_p2  ;;  %s254_s11 = sshll.u32 %s969_s10, 4  ;;  %s1053_s11 = int_to_ptr.vmem [resolvable:$true] %s254_s11 }
  0x11   : > { %s243_s13 = sshll.u32 %s970_s12, 4  ;;  %s971_s15 = smov [#allocation11]   ;;  %s1061_s13 = int_to_ptr.vmem [resolvable:$true] %s243_s13 }
  0x12   : > { %s1347_s9 = scalar_select %p1046_p3, 1, 0 }
  0x13   : > { %p646_p5 = pneg %p1046_p3  ;;  %s1063_s16 = sshll.u32 %s971_s15, 4  ;;  %s266_s16 = int_to_ptr.vmem [resolvable:$true] %s1063_s16 }
  0x14   : > { %s718_s19 = scalar_lea.hbm %s1337_s1, 16 }
  0x15   : > { %p1057_p6 = pnand %p646_p5, %p1344_p1  ;;  %p719_p7 = scmp.ne.s32.totalorder %s1337_s1, %s718_s19 }
  0x16   : > { %p725_p11 = scmp.lt.u32.totalorder %s718_s19, %s1337_s1 }
  0x17   : > { %p1073_p8 = pneg %p1057_p6 }
  0x19   : > { %p721_p9 = pnand %p1073_p8, %p719_p7 }
  0x1b   : > { %p722_p10 = pneg %p721_p9 }
  0x1d   : > { %p727_p12 = pnand %p725_p11, %p722_p10 }
  0x1f   : > { %730 = shalt.err (!%p727_p12)
}
  0x20   : > { %s731_s25 = scalar_lea.vmem %s1044_s30, 16  ;;  %s738_s5 = scalar_lea.vmem %s1044_s30, 32 }
  0x21   : > { %p732_p13 = scmp.ne.s32.totalorder %s1044_s30, %s731_s25  ;;  %p739_p5 = scmp.lt.s32.totalorder %s1044_s30, %s1044_s30 }
  0x22   : > { %p740_p7 = scmp.lt.s32.totalorder %s738_s5, %s731_s25 }
  0x23   : > { %p734_p0 = pnand %p732_p13, %p1073_p8 }
  0x24   : > { %p741_p9 = por %p740_p7, %p739_p5 }
  0x25   : > { %p735_p2 = pneg %p734_p0 }
  0x27   : > { %p742_p4 = pnand %p741_p9, %p735_p2 }
  0x29   : > { %745 = shalt.err (!%p742_p4)
}
  0x2a   : > { %649 = dma.hbm_to_vmem [thread:$0]  (!%p1057_p6), %s1337_s1, 16, %s1044_s30, [#allocation7]  }
  0x2b   : > { %s746_s18 = scalar_lea.hbm %s1339_s3, 16 }
  0x2c   : > { %p747_p10 = scmp.ne.s32.totalorder %s1339_s3, %s746_s18  ;;  %p753_p4 = scmp.lt.u32.totalorder %s746_s18, %s1339_s3 }
  0x2e   : > { %p749_p11 = pnand %p747_p10, %p1073_p8 }
  0x30   : > { %p750_p12 = pneg %p749_p11 }
  0x32   : > { %p755_p13 = pnand %p753_p4, %p750_p12 }
  0x34   : > { %758 = shalt.err (!%p755_p13)
}
  0x35   : > { %s759_s30 = scalar_lea.vmem %s1053_s11, 16  ;;  %s766_s24 = scalar_lea.vmem %s1053_s11, 32 }
  0x36   : > { %p760_p0 = scmp.ne.s32.totalorder %s1053_s11, %s759_s30  ;;  %p767_p7 = scmp.lt.s32.totalorder %s1053_s11, %s1053_s11 }
  0x37   : > { %p768_p9 = scmp.lt.s32.totalorder %s766_s24, %s759_s30 }
  0x38   : > { %p762_p2 = pnand %p760_p0, %p1073_p8 }
  0x39   : > { %p769_p10 = por %p768_p9, %p767_p7 }
  0x3a   : > { %p763_p5 = pneg %p762_p2 }
  0x3c   : > { %p770_p11 = pnand %p769_p10, %p763_p5 }
  0x3e   : > { %773 = shalt.err (!%p770_p11)
}
  0x3f   : > { %655 = dma.hbm_to_vmem [thread:$0]  (!%p1057_p6), %s1339_s3, 16, %s1053_s11, [#allocation10]  }
  0x40   : > { %s774_s15 = scalar_lea.hbm %s1338_s2, 16 }
  0x41   : > { %p775_p12 = scmp.ne.s32.totalorder %s1338_s2, %s774_s15  ;;  %p781_p0 = scmp.lt.u32.totalorder %s774_s15, %s1338_s2 }
  0x43   : > { %p777_p4 = pnand %p775_p12, %p1073_p8 }
  0x45   : > { %p778_p13 = pneg %p777_p4 }
  0x47   : > { %p783_p2 = pnand %p781_p0, %p778_p13 }
  0x49   : > { %786 = shalt.err (!%p783_p2)
}
  0x4a   : > { %s787_s11 = scalar_lea.vmem %s1061_s13, 16  ;;  %s794_s21 = scalar_lea.vmem %s1061_s13, 32 }
  0x4b   : > { %p788_p5 = scmp.ne.s32.totalorder %s1061_s13, %s787_s11  ;;  %p795_p10 = scmp.lt.s32.totalorder %s1061_s13, %s1061_s13 }
  0x4c   : > { %p796_p11 = scmp.lt.s32.totalorder %s794_s21, %s787_s11 }
  0x4d   : > { %p790_p7 = pnand %p788_p5, %p1073_p8 }
  0x4e   : > { %p797_p12 = por %p796_p11, %p795_p10 }
  0x4f   : > { %p791_p9 = pneg %p790_p7 }
  0x51   : > { %p798_p4 = pnand %p797_p12, %p791_p9 }
  0x53   : > { %801 = shalt.err (!%p798_p4)
}
  0x54   : > { %652 = dma.hbm_to_vmem [thread:$0]  (!%p1057_p6), %s1338_s2, 16, %s1061_s13, [#allocation7]  }
  0x55   : > { %s802_s5 = scalar_lea.hbm %s1340_s4, 16 }
  0x56   : > { %p803_p13 = scmp.ne.s32.totalorder %s1340_s4, %s802_s5  ;;  %p809_p5 = scmp.lt.u32.totalorder %s802_s5, %s1340_s4 }
  0x58   : > { %p805_p0 = pnand %p803_p13, %p1073_p8 }
  0x5a   : > { %p806_p2 = pneg %p805_p0 }
  0x5c   : > { %p811_p7 = pnand %p809_p5, %p806_p2 }
  0x5e   : > { %814 = shalt.err (!%p811_p7)
}
  0x5f   : > { %s815_s18 = scalar_lea.vmem %s266_s16, 16  ;;  %s822_s13 = scalar_lea.vmem %s266_s16, 32 }
  0x60   : > { %p816_p9 = scmp.ne.s32.totalorder %s266_s16, %s815_s18  ;;  %p823_p12 = scmp.lt.s32.totalorder %s266_s16, %s266_s16 }
  0x61   : > { %p824_p4 = scmp.lt.s32.totalorder %s822_s13, %s815_s18 }
  0x62   : > { %p818_p10 = pnand %p816_p9, %p1073_p8 }
  0x63   : > { %p825_p1 = por %p824_p4, %p823_p12 }
  0x64   : > { %p819_p11 = pneg %p818_p10 }
  0x66   : > { %p826_p3 = pnand %p825_p1, %p819_p11 }
  0x68   : > { %829 = shalt.err (!%p826_p3)
}
  0x69   : > { %658 = dma.hbm_to_vmem [thread:$0]  (!%p1057_p6), %s1340_s4, 16, %s266_s16, [#allocation10]  }
  0x6a   : > { %s597_s22 = sadd.s32 4294967294, %s966_s29   ;;  %s1164_s14 = sadd.s32 1, %s966_s29  }
  0x6b   : > { %s35_s11 = ssub.s32 %s966_s29, %s1164_s14  ;;  %s38_s21 = sadd.s32 1, %s962_s28 }
  0x6c   : > { %p36_p1 = scmp.eq.s32.totalorder %s35_s11, 0  ;;  %p45_p3 = scmp.ne.s32.totalorder %s962_s28, %s958_s27 }
  0x6d   : > { %p46_p8 = scmp.eq.s32.totalorder %s966_s29, 0  ;;  %p51_p13 = scmp.ne.s32.totalorder %s958_s27, %s954_s26 }
  0x6e   : > { %s1175_s23 = scalar_select %p36_p1, %s962_s28, %s38_s21  }
  0x6f   : > { %p1177_p0 = por %p46_p8, %p45_p3  ;;  %p1351_p2 = scmp.eq.s32.totalorder %s1039_s8, 0 }
  0x70   : > { %p180_p5 = scmp.eq.s32.totalorder %s1039_s8, 1  ;;  %p186_p7 = scmp.eq.s32.totalorder %s597_s22, 1 }
  0x71   : > { %p1183_p6 = por %p1351_p2, %p51_p13  ;;  %p674_p9 = scmp.lt.s32.totalorder %s966_s29, 2 }
  0x72   : > { %s279_s24 = sand.u32 1, %s962_s28   ;;  %p1190_p10 = por %p180_p5, %p45_p3 }
  0x73   : > { %p1194_p11 = por %p186_p7, %p51_p13  ;;  %s604_s10 = sshll.u32 %s279_s24, 3 }
  0x74   : > { %s1353_s25 = scalar_select %p1190_p10, 1, 0 }
  0x75   : > { %s1354_s5 = scalar_select %p1194_p11, 1, 0 }
  0x76   : > { %s605_s12 = sshll.u32 %s966_s29, 7  ;;  %s283_s13 = scalar_lea.vmem [#allocation3], %s604_s10 }
  0x77   : > { %s1202_s18 = scalar_lea.hbm %s1336_s0, %s605_s12  ;;  %s290_s19 = sshll.u32 %s283_s13, 4  ;;  %s1204_s19 = int_to_ptr.vmem [resolvable:$true] %s290_s19 }
  0x78   : > { %p1208_p12 = pnand %p674_p9, %p1177_p0  ;;  %s280_s22 = scalar_lea.sflag [#allocation4], %s279_s24 }
  0x79   : > { %s830_s11 = scalar_lea.hbm %s1202_s18, 128  ;;  %s835_s12 = scalar_lea.hbm %s1336_s0, 256 }
  0x7a   : > { %p831_p4 = scmp.ne.s32.totalorder %s1202_s18, %s830_s11  ;;  %p832_p1 = pneg %p1208_p12 }
  0x7b   : > { %p836_p13 = scmp.lt.u32.totalorder %s1202_s18, %s1336_s0  ;;  %p837_p0 = scmp.lt.u32.totalorder %s835_s12, %s830_s11 }
  0x7c   : > { %p833_p3 = pnand %p832_p1, %p831_p4  ;;  %p839_p5 = scmp.lt.u32.totalorder %s830_s11, %s1202_s18 }
  0x7d   : > { %p838_p2 = por %p837_p0, %p836_p13 }
  0x7e   : > { %p834_p8 = pneg %p833_p3 }
  0x7f   : > { %p840_p7 = por %p839_p5, %p838_p2 }
  0x81   : > { %p841_p9 = pnand %p840_p7, %p834_p8 }
  0x83   : > { %844 = shalt.err (!%p841_p9)
}
  0x84   : > { %s845_s24 = scalar_lea.vmem %s1204_s19, 128  ;;  %s972_s17 = smov [#allocation3]  }
  0x85   : > { %p846_p4 = scmp.ne.s32.totalorder %s1204_s19, %s845_s24  ;;  %s850_s13 = sshll.u32 %s972_s17, 4  ;;  %s851_s13 = int_to_ptr.vmem [resolvable:$false] %s850_s13 }
  0x86   : > { %s852_s21 = scalar_lea.vmem %s851_s13, 256  ;;  %p853_p10 = scmp.lt.s32.totalorder %s1204_s19, %s851_s13 }
  0x87   : > { %p848_p3 = pnand %p846_p4, %p832_p1  ;;  %p854_p13 = scmp.lt.s32.totalorder %s852_s21, %s845_s24 }
  0x89   : > { %p849_p11 = pneg %p848_p3  ;;  %p855_p0 = por %p854_p13, %p853_p10 }
  0x8b   : > { %p856_p2 = pnand %p855_p0, %p849_p11 }
  0x8d   : > { %859 = shalt.err (!%p856_p2)
}
  0x8e   : > { %662 = dma.hbm_to_vmem [thread:$0]  (!%p1208_p12), %s1202_s18, 128, %s1204_s19, %s280_s22  }
  0x8f   : > { %p1356_p8 = scmp.ne.s32.totalorder %s1347_s9, 0 }
  0x90   : > { %s1240_s11 = sand.u32 (!%p1356_p8), 1, %s958_s27  }
  0x91   : > { %299 = sbr.rel (%p1356_p8) target bundleno = 644 (0x284), region = 44  ;;  %s607_s10 = sshll.u32 (!%p1356_p8), %s1240_s11, 3 }
  0x92   : > { %s302_s12 = scalar_lea.sflag (!%p1356_p8), [#allocation4], %s1240_s11  ;;  %s305_s30 = scalar_lea.vmem (!%p1356_p8), [#allocation3], %s607_s10 }
  0x98   : > { %933 = dma.done.wait (%p1183_p6), %s302_s12, 128  }
  0x99   : > { %935 = vsyncadd (%p1183_p6), %s302_s12, 4294967168  ;;  %p1357_p10 = scmp.eq.s32.totalorder %s1039_s8, 0 }
  0x9b   : > { %937 = dma.done.wait (%p1357_p10), [#allocation7], 32   ;;  %p1358_p11 = pmov %p1357_p10 }
  0x9c   : > { %p1359_p12 = pmov %p1357_p10 }
  0x9d   : > { %939 = vsyncadd (%p1358_p11), [#allocation7], 4294967264 }
  0x9e   : > { %941 = dma.done.wait (%p1359_p12), [#allocation10], 32   ;;  %p1360_p1 = pmov %p1357_p10 }
  0x9f   : > { %vm360_vm0 = vcmask 258048   ;;  %v357_v1 = vld [vmem:[%s305_s30] sm:$0x1f]  ;;  %v614_v12 = vld [vmem:[#allocation6] ss:$0 sm:$0xff]  ;;  %vm404_vm1 = vcmask 253952  }
  0xa0   : > { %943 = vsyncadd (%p1360_p1), [#allocation10], 4294967264  ;;  %v361_v2 = vsel %vm360_vm0, %v357_v1, 0.0  ;;  %v615_v14 = vld [vmem:[#allocation8] ss:$0 sm:$0xff]  ;;  %s349_s9 = scalar_lea.vmem [#allocation12], %s607_s10 }
  0xa1   : > { %362 = vadd.xlane.f32.xlu0 %v361_v2  ;;  %v402_v16 = vld [vmem:[#allocation11] sm:$0x1]  ;;  %v616_v18 = vld [vmem:[#allocation9] ss:$0 sm:$0xff]  ;;  %vm398_vm2 = vcmask 258049   ;;  %s620_s16 = sshll.u32 %s1039_s8, 7 }
  0xa2   : > { %s1267_s20 = scalar_lea.hbm %s1342_s6, %s620_s16  ;;  %s444_s22 = sshll.u32 %s349_s9, 4  ;;  %s445_s22 = int_to_ptr.vmem [resolvable:$true] %s444_s22 }
  0xa3   : > { %s426_s15 = scalar_lea.sflag [#allocation5], %s1240_s11  ;;  %s860_s24 = scalar_lea.vmem %s445_s22, 128 }
  0xa4   : > { %p861_p6 = scmp.ne.s32.totalorder %s445_s22, %s860_s24  ;;  %p1361_p5 = scmp.ne.s32.totalorder %s1353_s25, 0 }
  0xa5   : > { %s973_s17 = smov [#allocation12]  }
  0xa6   : > { %p862_p7 = pnand %p861_p6, %p1361_p5  ;;  %s864_s13 = sshll.u32 %s973_s17, 4  ;;  %s865_s13 = int_to_ptr.vmem [resolvable:$false] %s864_s13 }
  0xa7   : > { %s866_s21 = scalar_lea.vmem %s865_s13, 256  ;;  %p867_p4 = scmp.lt.s32.totalorder %s445_s22, %s865_s13 }
  0xa8   : > { %p863_p9 = pneg %p862_p7  ;;  %p868_p3 = scmp.lt.s32.totalorder %s866_s21, %s860_s24 }
  0xaa   : > { %p869_p13 = por %p868_p3, %p867_p4 }
  0xac   : > { %p870_p0 = pnand %p869_p13, %p863_p9 }
 0x12e   : > { %v363_v3 = vpop.xlane.xlu0 %362 }
 0x12f   : > { %v365_v4 = vmul.f32 0.03125, %v363_v3 }
 0x131   : > { %v366_v5 = vsub.f32 %v357_v1, %v365_v4 }
 0x133   : > { %v367_v6 = vmul.f32 %v366_v5, %v366_v5 }
 0x135   : > { %v368_v7 = vsel %vm360_vm0, %v367_v6, 0.0 }
 0x136   : > { %369 = vadd.xlane.f32.xlu0 %v368_v7 }
 0x1c3   : > { %v370_v8 = vpop.xlane.xlu0 %369 }
 0x1c4   : > { %v371_v9 = vmul.f32 0.03125, %v370_v8 }
 0x1c6   : > { %v372_v10 = vadd.f32 1e-06, %v371_v9 }
 0x1c8   : > { %716 = vrsqrt.f32 %v372_v10 }
 0x1d2   : > { %v717_v11 = vpop.eup %716 }
 0x1d3   : > { %v374_v13 = vmul.f32 %v717_v11, %v366_v5 }
 0x1d5   : > { %v381_v15 = vmul.f32 %v614_v12, %v374_v13 }
 0x1d7   : > { %v388_v17 = vadd.f32 %v615_v14, %v381_v15 }
 0x1d9   : > { %v403_v19 = vmul.f32 %v402_v16, %v388_v17  ;;  %389 = vst.msk [vmem:[%s349_s9] sm:$0x1f] %vm360_vm0, %v388_v17  ;;  %v397_v21 = vmul.f32 %v616_v18, %v388_v17 }
 0x1db   : > { %v405_v20 = vsel %vm404_vm1, %v403_v19, 0.0  ;;  %v399_v22 = vsel %vm398_vm2, %v397_v21, 0.0 }
 0x1dc   : > { %406 = vadd.xlane.f32.xlu1 %v405_v20 }
 0x1e0   : > { %400 = vadd.xlane.f32.xlu1 %v399_v22 }
 0x1e1   : > { %873 = shalt.err (!%p870_p0)
}
 0x1e2   : > { %s874_s10 = scalar_lea.hbm %s1267_s20, 128  ;;  %s878_s9 = scalar_lea.hbm %s1342_s6, 256 }
 0x1e3   : > { %p875_p2 = scmp.ne.s32.totalorder %s1267_s20, %s874_s10  ;;  %p879_p11 = scmp.lt.u32.totalorder %s1267_s20, %s1342_s6 }
 0x1e4   : > { %p880_p12 = scmp.lt.u32.totalorder %s878_s9, %s874_s10  ;;  %p882_p6 = scmp.lt.u32.totalorder %s874_s10, %s1267_s20 }
 0x1e5   : > { %p876_p8 = pnand %p875_p2, %p1361_p5 }
 0x1e6   : > { %p881_p1 = por %p880_p12, %p879_p11 }
 0x1e7   : > { %p877_p10 = pneg %p876_p8 }
 0x1e8   : > { %p883_p7 = por %p882_p6, %p881_p1 }
 0x1ea   : > { %p884_p9 = pnand %p883_p7, %p877_p10 }
 0x1ec   : > { %887 = shalt.err (!%p884_p9)
}
 0x1ed   : > { %642 = dma.vmem_to_hbm [thread:$0]  (%p1361_p5), %s445_s22, 128, %s1267_s20, %s426_s15   ;;  %v408_v23 = vlaneseq  ;;  %v617_v28 = vld [vmem:[#allocation2] ss:$0 sm:$0xff]  ;;  %vm423_vm3 = vcmask 4097  }
 0x1ee   : > { %s613_s19 = sshll.u32 %s1240_s11, 2  ;;  %s621_s24 = sshll.u32 %s1039_s8, 6 }
 0x1ef   : > { %v409_v24 = vshrl.u32 %v408_v23, 7  ;;  %s356_s17 = scalar_lea.vmem [#allocation13], %s613_s19  ;;  %s1292_s22 = scalar_lea.hbm %s1343_s7, %s621_s24 }
 0x1f0   : > { %s457_s13 = sshll.u32 %s356_s17, 4  ;;  %s431_s15 = scalar_lea.sflag [#allocation14], %s1240_s11  ;;  %s1294_s13 = int_to_ptr.vmem [resolvable:$true] %s457_s13 }
 0x1f1   : > { %v410_v25 = vsub.s32 0, %v409_v24  ;;  %s888_s10 = scalar_lea.vmem %s1294_s13, 64  ;;  %s974_s8 = smov [#allocation13]  }
 0x1f2   : > { %p889_p4 = scmp.ne.s32.totalorder %s1294_s13, %s888_s10  ;;  %s892_s12 = sshll.u32 %s974_s8, 4  ;;  %s893_s12 = int_to_ptr.vmem [resolvable:$false] %s892_s12 }
 0x1f3   : > { %s894_s30 = scalar_lea.vmem %s893_s12, 128  ;;  %p895_p0 = scmp.lt.s32.totalorder %s1294_s13, %s893_s12 }
 0x1f4   : > { %p890_p3 = pnand %p889_p4, %p1361_p5  ;;  %p896_p2 = scmp.lt.s32.totalorder %s894_s30, %s888_s10 }
 0x1f6   : > { %p891_p13 = pneg %p890_p3  ;;  %p897_p8 = por %p896_p2, %p895_p0 }
 0x1f8   : > { %p898_p10 = pnand %p897_p8, %p891_p13 }
 0x269   : > { %v407_v26 = vpop.xlane.xlu1 %406 }
 0x26a   : > { %v411_v27 = vrot.slane %v407_v26, %v410_v25 }
 0x26d   : > { %v401_v29 = vpop.xlane.xlu1 %400 }
 0x26e   : > { %v412_v30 = vadd.f32 %v411_v27, %v401_v29 }
 0x270   : > { %v420_v31 = vadd.f32 %v617_v28, %v412_v30 }
 0x272   : > { %v421_v32 = vmax.f32 %v420_v31, 0.0 }
 0x274   : > { %v422_v33 = vadd.f32 0.001, %v421_v32 }
 0x276   : > { %424 = vst.msk [vmem:[%s356_s17 - $0x1] sm:$0x1e] %vm423_vm3, %v422_v33 }
 0x277   : > { %901 = shalt.err (!%p898_p10)
}
 0x278   : > { %s902_s11 = scalar_lea.hbm %s1292_s22, 64  ;;  %s906_s18 = scalar_lea.hbm %s1343_s7, 128 }
 0x279   : > { %p903_p11 = scmp.ne.s32.totalorder %s1292_s22, %s902_s11  ;;  %p907_p6 = scmp.lt.u32.totalorder %s1292_s22, %s1343_s7 }
 0x27a   : > { %p908_p7 = scmp.lt.u32.totalorder %s906_s18, %s902_s11  ;;  %p910_p4 = scmp.lt.u32.totalorder %s902_s11, %s1292_s22 }
 0x27b   : > { %p904_p12 = pnand %p903_p11, %p1361_p5 }
 0x27c   : > { %p909_p9 = por %p908_p7, %p907_p6 }
 0x27d   : > { %p905_p1 = pneg %p904_p12 }
 0x27e   : > { %p911_p3 = por %p910_p4, %p909_p9 }
 0x280   : > { %p912_p13 = pnand %p911_p3, %p905_p1 }
 0x282   : > { %915 = shalt.err (!%p912_p13)
}
 0x283   : > { %643 = dma.vmem_to_hbm [thread:$0]  (%p1361_p5), %s1294_s13, 64, %s1292_s22, %s431_s15  }
 0x284 PF: > { %s469_s17 = sand.u32 1, %s954_s26   ;;  %p1362_p0 = scmp.ne.s32.totalorder %s1354_s5, 0 }
 0x285   : > { %p1363_p2 = scmp.ge.s32.totalorder %s966_s29, 2  ;;  %s470_s21 = scalar_lea.sflag [#allocation5], %s469_s17 }
 0x287   : > { %p664_p8 = pnand %p1363_p2, %p1362_p0 }
 0x289   : > { %945 = dma.done.wait (!%p664_p8), %s470_s21, 128  }
 0x28a   : > { %947 = vsyncadd (!%p664_p8), %s470_s21, 4294967168  ;;  %s479_s20 = scalar_lea.sflag [#allocation14], %s469_s17 }
 0x28b   : > { %949 = dma.done.wait (!%p664_p8), %s479_s20, 64  }
 0x28c   : > { %951 = vsyncadd (!%p664_p8), %s479_s20, 4294967232  ;;  %p28_p5 = scmp.ge.s32.totalorder %s1164_s14, 4   ;;  %s1364_s26 = smov %s958_s27 }
 0x28d   : > { %s1365_s27 = smov %s962_s28  ;;  %s1366_s28 = smov %s1175_s23 }
 0x28e   : > { %s1367_s29 = smov %s1164_s14  ;;  %30 = sbr.rel (!%p28_p5) target bundleno = 12 (0xc), region = 122 }
 0x295   :  { %484 = vsyncpa [#allocation4], 1 }
 0x296   :  { %486 = vsyncpa [#allocation4 + $0x1], 1 }
 0x297   :  { %487 = vsyncpa [#allocation7], 1 }
 0x298   :  { %488 = vsyncpa [#allocation10], 1 }
 0x299   :  { %489 = vsyncpa [#allocation5], 1 }
 0x29a   :  { %491 = vsyncpa [#allocation5 + $0x1], 1 }
 0x29b   :  { %492 = vsyncpa [#allocation14], 1 }
 0x29c   :  { %494 = vsyncpa [#allocation14 + $0x1], 1 }

// kernel: dino_depther_forward.7
= control target key start
LH: loop header
LB: loop body
LE: loop exit
PB: predicated region body
PF: predicated region fallthrough
CT: control target
= control target key end

     0   :  { %s2869_s0 = inlined_call_operand.hbm [shape: f32[2,5,32], index: 0, kind: input, shape index: {}]   ;;  %s2870_s1 = inlined_call_operand.hbm [shape: f32[1,32], index: 1, kind: input, shape index: {}]   ;;  %s2871_s2 = inlined_call_operand.hbm [shape: f32[1,32], index: 2, kind: input, shape index: {}]   ;;  %s2872_s3 = inlined_call_operand.hbm [shape: bf16[32,96], index: 3, kind: input, shape index: {}]   ;;  %s2873_s4 = inlined_call_operand.hbm [shape: f32[1,96], index: 4, kind: input, shape index: {}]   ;;  %s2874_s5 = inlined_call_operand.hbm [shape: bf16[32,32], index: 5, kind: input, shape index: {}]   ;;  %s2875_s6 = inlined_call_operand.hbm [shape: f32[1,32], index: 6, kind: input, shape index: {}]   ;;  %s2876_s7 = inlined_call_operand.hbm [shape: f32[1,32], index: 7, kind: input, shape index: {}]   ;;  %s2877_s8 = inlined_call_operand.hbm [shape: f32[1,32], index: 8, kind: input, shape index: {}]   ;;  %s2878_s9 = inlined_call_operand.hbm [shape: bf16[32,128], index: 9, kind: input, shape index: {}]   ;;  %s2879_s10 = inlined_call_operand.hbm [shape: f32[1,128], index: 10, kind: input, shape index: {}]   ;;  %s2880_s11 = inlined_call_operand.hbm [shape: bf16[128,32], index: 11, kind: input, shape index: {}]   ;;  %s2881_s12 = inlined_call_operand.hbm [shape: f32[1,32], index: 12, kind: input, shape index: {}]   ;;  %s2882_s13 = inlined_call_operand.hbm [shape: f32[2,5,32], index: 13, kind: output, shape index: {}]  }
   0x1   :  { %2892 = sst [smem:[#allocation35_spill]] %s2869_s0 }
   0x2   :  { %2893 = sst [smem:[#allocation36_spill]] %s2870_s1 }
   0x3   :  { %2894 = sst [smem:[#allocation37_spill]] %s2871_s2 }
   0x4   :  { %2895 = sst [smem:[#allocation38_spill]] %s2872_s3 }
   0x5   :  { %2896 = sst [smem:[#allocation39_spill]] %s2882_s13 }
   0x6   :  { %18 = vsyncpa [#allocation4], 0 }
   0x7   :  { %20 = vsyncpa [#allocation4 + $0x1], 0 }
   0x8   :  { %21 = vsyncpa [#allocation7], 0 }
   0x9   :  { %22 = vsyncpa [#allocation10], 0 }
   0xa   :  { %23 = vsyncpa [#allocation13], 0 }
   0xb   :  { %24 = vsyncpa [#allocation16], 0 }
   0xc   :  { %25 = vsyncpa [#allocation19], 0 }
   0xd   :  { %26 = vsyncpa [#allocation22], 0 }
   0xe   :  { %27 = vsyncpa [#allocation5], 0 }
   0xf   :  { %29 = vsyncpa [#allocation5 + $0x1], 0  ;;  %s2356_s25 = smov 0   ;;  %s2358_s26 = smov 0  }
  0x10   :  { %s2360_s27 = smov 0   ;;  %s2362_s28 = smov 0  }
  0x11 LB: > { %s2261_s29 = smov [#allocation6]   ;;  %s2377_s14 = sadd.s32 4294967295, %s2259_s28   ;;  %s2259_s28 = sphi %s2362_s28, %s2935_s28   ;;  %s2255_s27 = sphi %s2360_s27, %s2934_s27   ;;  %s2251_s26 = sphi %s2358_s26, %s2933_s26   ;;  %s2247_s25 = sphi %s2356_s25, %s2932_s25  }
  0x12   : > { %s357_s30 = sshll.u32 %s2261_s29, 4  ;;  %2897 = sst [smem:[#allocation33_spill]] %s2377_s14  ;;  %s2382_s30 = int_to_ptr.vmem [resolvable:$true] %s357_s30 }
  0x13   : > { %p1439_p0 = scmp.ge.s32.totalorder %s2259_s28, 1  ;;  %p2889_p1 = scmp.eq.s32.totalorder %s2377_s14, 0 }
  0x14   : > { %p344_p2 = scmp.lt.s32.totalorder %s2259_s28, 3  ;;  %s2262_s16 = smov [#allocation9]  }
  0x15   : > { %s378_s17 = sshll.u32 %s2262_s16, 4  ;;  %s2263_s19 = smov [#allocation12]   ;;  %s2391_s17 = int_to_ptr.vmem [resolvable:$true] %s378_s17 }
  0x16   : > { %p2384_p3 = pnand %p1439_p0, %p344_p2  ;;  %s402_s20 = sshll.u32 %s2263_s19, 4  ;;  %s2399_s20 = int_to_ptr.vmem [resolvable:$true] %s402_s20 }
  0x17   : > { %s2901_s1 = sld [smem:[#allocation36_spill]] }
  0x18   : > { %s2898_s15 = scalar_select %p2384_p3, 1, 0 }
  0x19   : > { %p1649_p5 = pneg %p2384_p3 }
  0x1a   : > { %2899 = sst [smem:[#allocation34_spill]] %s2898_s15 }
  0x1b   : > { %p2395_p6 = pnand %p1649_p5, %p2889_p1 }
  0x1d   : > { %s1803_s23 = scalar_lea.hbm %s2901_s1, 16  ;;  %p2409_p8 = pneg %p2395_p6 }
  0x1e   : > { %p1804_p7 = scmp.ne.s32.totalorder %s2901_s1, %s1803_s23  ;;  %p1810_p11 = scmp.lt.u32.totalorder %s1803_s23, %s2901_s1 }
  0x20   : > { %p1806_p9 = pnand %p2409_p8, %p1804_p7 }
  0x22   : > { %p1807_p10 = pneg %p1806_p9 }
  0x24   : > { %p1812_p12 = pnand %p1810_p11, %p1807_p10 }
  0x26   : > { %1815 = shalt.err (!%p1812_p12)
}
  0x27   : > { %s1816_s21 = scalar_lea.vmem %s2382_s30, 16  ;;  %s1823_s22 = scalar_lea.vmem %s2382_s30, 32 }
  0x28   : > { %p1817_p13 = scmp.ne.s32.totalorder %s2382_s30, %s1816_s21  ;;  %p1824_p5 = scmp.lt.s32.totalorder %s2382_s30, %s2382_s30 }
  0x29   : > { %p1825_p7 = scmp.lt.s32.totalorder %s1823_s22, %s1816_s21 }
  0x2a   : > { %p1819_p0 = pnand %p1817_p13, %p2409_p8 }
  0x2b   : > { %p1826_p9 = por %p1825_p7, %p1824_p5 }
  0x2c   : > { %p1820_p2 = pneg %p1819_p0 }
  0x2e   : > { %p1827_p4 = pnand %p1826_p9, %p1820_p2 }
  0x30   : > { %1830 = shalt.err (!%p1827_p4)
}
  0x31   : > { %1652 = dma.hbm_to_vmem [thread:$0]  (!%p2395_p6), %s2901_s1, 16, %s2382_s30, [#allocation7]  }
  0x32   : > { %s2903_s3 = sld [smem:[#allocation38_spill]] }
  0x38   : > { %s1831_s19 = scalar_lea.hbm %s2903_s3, 256 }
  0x39   : > { %p1832_p10 = scmp.ne.s32.totalorder %s2903_s3, %s1831_s19  ;;  %p1838_p4 = scmp.lt.u32.totalorder %s1831_s19, %s2903_s3 }
  0x3b   : > { %p1834_p11 = pnand %p1832_p10, %p2409_p8 }
  0x3d   : > { %p1835_p12 = pneg %p1834_p11 }
  0x3f   : > { %p1840_p13 = pnand %p1838_p4, %p1835_p12 }
  0x41   : > { %1843 = shalt.err (!%p1840_p13)
}
  0x42   : > { %s1844_s30 = scalar_lea.vmem %s2391_s17, 256  ;;  %p1852_p7 = scmp.lt.s32.totalorder %s2391_s17, %s2391_s17 }
  0x43   : > { %p1845_p0 = scmp.ne.s32.totalorder %s2391_s17, %s1844_s30  ;;  %p1853_p9 = scmp.lt.s32.totalorder %s1844_s30, %s1844_s30 }
  0x45   : > { %p1847_p2 = pnand %p1845_p0, %p2409_p8  ;;  %p1854_p10 = por %p1853_p9, %p1852_p7 }
  0x47   : > { %p1848_p5 = pneg %p1847_p2 }
  0x49   : > { %p1855_p11 = pnand %p1854_p10, %p1848_p5 }
  0x4b   : > { %1858 = shalt.err (!%p1855_p11)
}
  0x4c   : > { %s2264_s0 = smov 64   ;;  %s2265_s15 = smov 4  }
  0x4d   : > { %1658 = dma.hbm_to_vmem [thread:$0]  (!%p2395_p6), %s2903_s3, 256, %s2391_s17, [#allocation10], %s2264_s0, %s2264_s0, %s2265_s15  }
  0x4e   : > { %s1859_s19 = scalar_lea.hbm %s2874_s5, 256 }
  0x4f   : > { %p1860_p12 = scmp.ne.s32.totalorder %s2874_s5, %s1859_s19  ;;  %p1866_p0 = scmp.lt.u32.totalorder %s1859_s19, %s2874_s5 }
  0x51   : > { %p1862_p4 = pnand %p1860_p12, %p2409_p8 }
  0x53   : > { %p1863_p13 = pneg %p1862_p4 }
  0x55   : > { %p1868_p2 = pnand %p1866_p0, %p1863_p13 }
  0x57   : > { %1871 = shalt.err (!%p1868_p2)
}
  0x58   : > { %s1872_s17 = scalar_lea.vmem %s2399_s20, 256  ;;  %p1880_p10 = scmp.lt.s32.totalorder %s2399_s20, %s2399_s20 }
  0x59   : > { %p1873_p5 = scmp.ne.s32.totalorder %s2399_s20, %s1872_s17  ;;  %p1881_p11 = scmp.lt.s32.totalorder %s1872_s17, %s1872_s17 }
  0x5b   : > { %p1875_p7 = pnand %p1873_p5, %p2409_p8  ;;  %p1882_p12 = por %p1881_p11, %p1880_p10 }
  0x5d   : > { %p1876_p9 = pneg %p1875_p7 }
  0x5f   : > { %p1883_p4 = pnand %p1882_p12, %p1876_p9 }
  0x61   : > { %1886 = shalt.err (!%p1883_p4)
}
  0x62   : > { %1664 = dma.hbm_to_vmem [thread:$0]  (!%p2395_p6), %s2874_s5, 256, %s2399_s20, [#allocation13], %s2264_s0, %s2264_s0, %s2265_s15  }
  0x63   : > { %s2266_s23 = smov [#allocation15]   ;;  %s2267_s29 = smov [#allocation18]  }
  0x64   : > { %s427_s24 = sshll.u32 %s2266_s23, 4  ;;  %s448_s19 = sshll.u32 %s2267_s29, 4  ;;  %s428_s24 = int_to_ptr.vmem [resolvable:$true] %s427_s24  ;;  %s449_s19 = int_to_ptr.vmem [resolvable:$true] %s448_s19 }
  0x65   : > { %s1887_s30 = scalar_lea.hbm %s2876_s7, 16 }
  0x66   : > { %p1888_p13 = scmp.ne.s32.totalorder %s2876_s7, %s1887_s30  ;;  %p1894_p5 = scmp.lt.u32.totalorder %s1887_s30, %s2876_s7 }
  0x68   : > { %p1890_p0 = pnand %p1888_p13, %p2409_p8 }
  0x6a   : > { %p1891_p2 = pneg %p1890_p0 }
  0x6c   : > { %p1896_p7 = pnand %p1894_p5, %p1891_p2 }
  0x6e   : > { %1899 = shalt.err (!%p1896_p7)
}
  0x6f   : > { %s1900_s20 = scalar_lea.vmem %s428_s24, 16  ;;  %s1907_s13 = scalar_lea.vmem %s428_s24, 32 }
  0x70   : > { %p1901_p9 = scmp.ne.s32.totalorder %s428_s24, %s1900_s20  ;;  %p1908_p12 = scmp.lt.s32.totalorder %s428_s24, %s428_s24 }
  0x71   : > { %p1909_p4 = scmp.lt.s32.totalorder %s1907_s13, %s1900_s20 }
  0x72   : > { %p1903_p10 = pnand %p1901_p9, %p2409_p8 }
  0x73   : > { %p1910_p1 = por %p1909_p4, %p1908_p12 }
  0x74   : > { %p1904_p11 = pneg %p1903_p10 }
  0x76   : > { %p1911_p3 = pnand %p1910_p1, %p1904_p11 }
  0x78   : > { %1914 = shalt.err (!%p1911_p3)
}
  0x79   : > { %1670 = dma.hbm_to_vmem [thread:$0]  (!%p2395_p6), %s2876_s7, 16, %s428_s24, [#allocation16]  }
  0x7a   : > { %s1915_s21 = scalar_lea.hbm %s2878_s9, 256 }
  0x7b   : > { %p1916_p13 = scmp.ne.s32.totalorder %s2878_s9, %s1915_s21  ;;  %p1922_p3 = scmp.lt.u32.totalorder %s1915_s21, %s2878_s9 }
  0x7d   : > { %p1918_p0 = pnand %p1916_p13, %p2409_p8 }
  0x7f   : > { %p1919_p1 = pneg %p1918_p0 }
  0x81   : > { %p1924_p2 = pnand %p1922_p3, %p1919_p1 }
  0x83   : > { %1927 = shalt.err (!%p1924_p2)
}
  0x84   : > { %s1928_s20 = scalar_lea.vmem %s449_s19, 256  ;;  %p1936_p10 = scmp.lt.s32.totalorder %s449_s19, %s449_s19 }
  0x85   : > { %p1929_p5 = scmp.ne.s32.totalorder %s449_s19, %s1928_s20  ;;  %p1937_p11 = scmp.lt.s32.totalorder %s1928_s20, %s1928_s20 }
  0x87   : > { %p1931_p7 = pnand %p1929_p5, %p2409_p8  ;;  %p1938_p12 = por %p1937_p11, %p1936_p10 }
  0x89   : > { %p1932_p9 = pneg %p1931_p7 }
  0x8b   : > { %p1939_p4 = pnand %p1938_p12, %p1932_p9 }
  0x8d   : > { %1942 = shalt.err (!%p1939_p4)
}
  0x8e   : > { %1676 = dma.hbm_to_vmem [thread:$0]  (!%p2395_p6), %s2878_s9, 256, %s449_s19, [#allocation19], %s2264_s0, %s2264_s0, %s2265_s15  }
  0x8f   : > { %s2268_s3 = smov [#allocation21]   ;;  %s2269_s14 = smov [#allocation8]  }
  0x90   : > { %s472_s23 = sshll.u32 %s2268_s3, 4  ;;  %s368_s29 = sshll.u32 %s2269_s14, 4  ;;  %s473_s23 = int_to_ptr.vmem [resolvable:$true] %s472_s23  ;;  %s369_s29 = int_to_ptr.vmem [resolvable:$true] %s368_s29 }
  0x91   : > { %s1943_s30 = scalar_lea.hbm %s2880_s11, 1024 }
  0x92   : > { %p1944_p13 = scmp.ne.s32.totalorder %s2880_s11, %s1943_s30  ;;  %p1950_p3 = scmp.lt.u32.totalorder %s1943_s30, %s2880_s11 }
  0x94   : > { %p1946_p0 = pnand %p1944_p13, %p2409_p8 }
  0x96   : > { %p1947_p1 = pneg %p1946_p0 }
  0x98   : > { %p1952_p2 = pnand %p1950_p3, %p1947_p1 }
  0x9a   : > { %1955 = shalt.err (!%p1952_p2)
}
  0x9b   : > { %s1956_s19 = scalar_lea.vmem %s473_s23, 1024  ;;  %p1964_p10 = scmp.lt.s32.totalorder %s473_s23, %s473_s23 }
  0x9c   : > { %p1957_p5 = scmp.ne.s32.totalorder %s473_s23, %s1956_s19  ;;  %p1965_p11 = scmp.lt.s32.totalorder %s1956_s19, %s1956_s19 }
  0x9e   : > { %p1959_p7 = pnand %p1957_p5, %p2409_p8  ;;  %p1966_p12 = por %p1965_p11, %p1964_p10 }
  0xa0   : > { %p1960_p9 = pneg %p1959_p7 }
  0xa2   : > { %p1967_p4 = pnand %p1966_p12, %p1960_p9 }
  0xa4   : > { %1970 = shalt.err (!%p1967_p4)
}
  0xa5   : > { %1682 = dma.hbm_to_vmem [thread:$0]  (!%p2395_p6), %s2880_s11, 1024, %s473_s23, [#allocation22], %s2264_s0, %s2264_s0, %s2265_s15  }
  0xa6   : > { %s2904_s2 = sld [smem:[#allocation37_spill]] }
  0xac   : > { %s1971_s22 = scalar_lea.hbm %s2904_s2, 16 }
  0xad   : > { %p1972_p13 = scmp.ne.s32.totalorder %s2904_s2, %s1971_s22  ;;  %p1978_p3 = scmp.lt.u32.totalorder %s1971_s22, %s2904_s2 }
  0xaf   : > { %p1974_p0 = pnand %p1972_p13, %p2409_p8 }
  0xb1   : > { %p1975_p1 = pneg %p1974_p0 }
  0xb3   : > { %p1980_p2 = pnand %p1978_p3, %p1975_p1 }
  0xb5   : > { %1983 = shalt.err (!%p1980_p2)
}
  0xb6   : > { %s1984_s24 = scalar_lea.vmem %s369_s29, 16  ;;  %s1991_s0 = scalar_lea.vmem %s369_s29, 32 }
  0xb7   : > { %p1985_p5 = scmp.ne.s32.totalorder %s369_s29, %s1984_s24  ;;  %p1992_p10 = scmp.lt.s32.totalorder %s369_s29, %s369_s29 }
  0xb8   : > { %p1993_p11 = scmp.lt.s32.totalorder %s1991_s0, %s1984_s24 }
  0xb9   : > { %p1987_p7 = pnand %p1985_p5, %p2409_p8 }
  0xba   : > { %p1994_p12 = por %p1993_p11, %p1992_p10 }
  0xbb   : > { %p1988_p9 = pneg %p1987_p7 }
  0xbd   : > { %p1995_p4 = pnand %p1994_p12, %p1988_p9 }
  0xbf   : > { %1998 = shalt.err (!%p1995_p4)
}
  0xc0   : > { %1655 = dma.hbm_to_vmem [thread:$0]  (!%p2395_p6), %s2904_s2, 16, %s369_s29, [#allocation7]  }
  0xc1   : > { %s2270_s19 = smov [#allocation11]   ;;  %s2271_s3 = smov [#allocation14]  }
  0xc2   : > { %s392_s13 = sshll.u32 %s2270_s19, 4  ;;  %s416_s14 = sshll.u32 %s2271_s3, 4  ;;  %s393_s13 = int_to_ptr.vmem [resolvable:$true] %s392_s13  ;;  %s417_s14 = int_to_ptr.vmem [resolvable:$true] %s416_s14 }
  0xc3   : > { %s1999_s30 = scalar_lea.hbm %s2873_s4, 16 }
  0xc4   : > { %p2000_p13 = scmp.ne.s32.totalorder %s2873_s4, %s1999_s30  ;;  %p2006_p3 = scmp.lt.u32.totalorder %s1999_s30, %s2873_s4 }
  0xc6   : > { %p2002_p0 = pnand %p2000_p13, %p2409_p8 }
  0xc8   : > { %p2003_p1 = pneg %p2002_p0 }
  0xca   : > { %p2008_p2 = pnand %p2006_p3, %p2003_p1 }
  0xcc   : > { %2011 = shalt.err (!%p2008_p2)
}
  0xcd   : > { %s2012_s29 = scalar_lea.vmem %s393_s13, 16  ;;  %s2019_s0 = scalar_lea.vmem %s393_s13, 32 }
  0xce   : > { %p2013_p5 = scmp.ne.s32.totalorder %s393_s13, %s2012_s29  ;;  %p2020_p10 = scmp.lt.s32.totalorder %s393_s13, %s393_s13 }
  0xcf   : > { %p2021_p11 = scmp.lt.s32.totalorder %s2019_s0, %s2012_s29 }
  0xd0   : > { %p2015_p7 = pnand %p2013_p5, %p2409_p8 }
  0xd1   : > { %p2022_p12 = por %p2021_p11, %p2020_p10 }
  0xd2   : > { %p2016_p9 = pneg %p2015_p7 }
  0xd4   : > { %p2023_p4 = pnand %p2022_p12, %p2016_p9 }
  0xd6   : > { %2026 = shalt.err (!%p2023_p4)
}
  0xd7   : > { %1661 = dma.hbm_to_vmem [thread:$0]  (!%p2395_p6), %s2873_s4, 16, %s393_s13, [#allocation10]  }
  0xd8   : > { %s2027_s21 = scalar_lea.hbm %s2875_s6, 16 }
  0xd9   : > { %p2028_p13 = scmp.ne.s32.totalorder %s2875_s6, %s2027_s21  ;;  %p2034_p3 = scmp.lt.u32.totalorder %s2027_s21, %s2875_s6 }
  0xdb   : > { %p2030_p0 = pnand %p2028_p13, %p2409_p8 }
  0xdd   : > { %p2031_p1 = pneg %p2030_p0 }
  0xdf   : > { %p2036_p2 = pnand %p2034_p3, %p2031_p1 }
  0xe1   : > { %2039 = shalt.err (!%p2036_p2)
}
  0xe2   : > { %s2040_s20 = scalar_lea.vmem %s417_s14, 16  ;;  %s2047_s13 = scalar_lea.vmem %s417_s14, 32 }
  0xe3   : > { %p2041_p5 = scmp.ne.s32.totalorder %s417_s14, %s2040_s20  ;;  %p2048_p10 = scmp.lt.s32.totalorder %s417_s14, %s417_s14 }
  0xe4   : > { %p2049_p11 = scmp.lt.s32.totalorder %s2047_s13, %s2040_s20 }
  0xe5   : > { %p2043_p7 = pnand %p2041_p5, %p2409_p8 }
  0xe6   : > { %p2050_p12 = por %p2049_p11, %p2048_p10 }
  0xe7   : > { %p2044_p9 = pneg %p2043_p7 }
  0xe9   : > { %p2051_p4 = pnand %p2050_p12, %p2044_p9 }
  0xeb   : > { %2054 = shalt.err (!%p2051_p4)
}
  0xec   : > { %1667 = dma.hbm_to_vmem [thread:$0]  (!%p2395_p6), %s2875_s6, 16, %s417_s14, [#allocation13]  }
  0xed   : > { %s2272_s0 = smov [#allocation17]   ;;  %s2273_s23 = smov [#allocation20]  }
  0xee   : > { %s438_s15 = sshll.u32 %s2272_s0, 4  ;;  %s462_s19 = sshll.u32 %s2273_s23, 4  ;;  %s439_s15 = int_to_ptr.vmem [resolvable:$true] %s438_s15  ;;  %s463_s19 = int_to_ptr.vmem [resolvable:$true] %s462_s19 }
  0xef   : > { %s2055_s22 = scalar_lea.hbm %s2877_s8, 16 }
  0xf0   : > { %p2056_p13 = scmp.ne.s32.totalorder %s2877_s8, %s2055_s22  ;;  %p2062_p3 = scmp.lt.u32.totalorder %s2055_s22, %s2877_s8 }
  0xf2   : > { %p2058_p0 = pnand %p2056_p13, %p2409_p8 }
  0xf4   : > { %p2059_p1 = pneg %p2058_p0 }
  0xf6   : > { %p2064_p2 = pnand %p2062_p3, %p2059_p1 }
  0xf8   : > { %2067 = shalt.err (!%p2064_p2)
}
  0xf9   : > { %s2068_s14 = scalar_lea.vmem %s439_s15, 16  ;;  %s2075_s13 = scalar_lea.vmem %s439_s15, 32 }
  0xfa   : > { %p2069_p5 = scmp.ne.s32.totalorder %s439_s15, %s2068_s14  ;;  %p2076_p10 = scmp.lt.s32.totalorder %s439_s15, %s439_s15 }
  0xfb   : > { %p2077_p11 = scmp.lt.s32.totalorder %s2075_s13, %s2068_s14 }
  0xfc   : > { %p2071_p7 = pnand %p2069_p5, %p2409_p8 }
  0xfd   : > { %p2078_p12 = por %p2077_p11, %p2076_p10 }
  0xfe   : > { %p2072_p9 = pneg %p2071_p7 }
 0x100   : > { %p2079_p4 = pnand %p2078_p12, %p2072_p9 }
 0x102   : > { %2082 = shalt.err (!%p2079_p4)
}
 0x103   : > { %1673 = dma.hbm_to_vmem [thread:$0]  (!%p2395_p6), %s2877_s8, 16, %s439_s15, [#allocation16]  }
 0x104   : > { %s2083_s3 = scalar_lea.hbm %s2879_s10, 16 }
 0x105   : > { %p2084_p13 = scmp.ne.s32.totalorder %s2879_s10, %s2083_s3  ;;  %p2090_p3 = scmp.lt.u32.totalorder %s2083_s3, %s2879_s10 }
 0x107   : > { %p2086_p0 = pnand %p2084_p13, %p2409_p8 }
 0x109   : > { %p2087_p1 = pneg %p2086_p0 }
 0x10b   : > { %p2092_p2 = pnand %p2090_p3, %p2087_p1 }
 0x10d   : > { %2095 = shalt.err (!%p2092_p2)
}
 0x10e   : > { %s2096_s1 = scalar_lea.vmem %s463_s19, 16  ;;  %s2103_s15 = scalar_lea.vmem %s463_s19, 32 }
 0x10f   : > { %p2097_p5 = scmp.ne.s32.totalorder %s463_s19, %s2096_s1  ;;  %p2104_p10 = scmp.lt.s32.totalorder %s463_s19, %s463_s19 }
 0x110   : > { %p2105_p11 = scmp.lt.s32.totalorder %s2103_s15, %s2096_s1 }
 0x111   : > { %p2099_p7 = pnand %p2097_p5, %p2409_p8 }
 0x112   : > { %p2106_p12 = por %p2105_p11, %p2104_p10 }
 0x113   : > { %p2100_p9 = pneg %p2099_p7 }
 0x115   : > { %p2107_p4 = pnand %p2106_p12, %p2100_p9 }
 0x117   : > { %2110 = shalt.err (!%p2107_p4)
}
 0x118   : > { %1679 = dma.hbm_to_vmem [thread:$0]  (!%p2395_p6), %s2879_s10, 16, %s463_s19, [#allocation19]  }
 0x119   : > { %s2274_s13 = smov [#allocation23]   ;;  %s2111_s23 = scalar_lea.hbm %s2881_s12, 16 }
 0x11a   : > { %s486_s24 = sshll.u32 %s2274_s13, 4  ;;  %p2112_p13 = scmp.ne.s32.totalorder %s2881_s12, %s2111_s23  ;;  %s487_s24 = int_to_ptr.vmem [resolvable:$true] %s486_s24 }
 0x11b   : > { %p2118_p3 = scmp.lt.u32.totalorder %s2111_s23, %s2881_s12 }
 0x11c   : > { %p2114_p0 = pnand %p2112_p13, %p2409_p8 }
 0x11e   : > { %p2115_p1 = pneg %p2114_p0 }
 0x120   : > { %p2120_p2 = pnand %p2118_p3, %p2115_p1 }
 0x122   : > { %2123 = shalt.err (!%p2120_p2)
}
 0x123   : > { %s2124_s19 = scalar_lea.vmem %s487_s24, 16  ;;  %s2131_s17 = scalar_lea.vmem %s487_s24, 32 }
 0x124   : > { %p2125_p5 = scmp.ne.s32.totalorder %s487_s24, %s2124_s19  ;;  %p2132_p10 = scmp.lt.s32.totalorder %s487_s24, %s487_s24 }
 0x125   : > { %p2133_p11 = scmp.lt.s32.totalorder %s2131_s17, %s2124_s19 }
 0x126   : > { %p2127_p7 = pnand %p2125_p5, %p2409_p8 }
 0x127   : > { %p2134_p12 = por %p2133_p11, %p2132_p10 }
 0x128   : > { %p2128_p9 = pneg %p2127_p7 }
 0x12a   : > { %p2135_p4 = pnand %p2134_p12, %p2128_p9 }
 0x12c   : > { %2138 = shalt.err (!%p2135_p4)
}
 0x12d   : > { %s2905_s16 = sld [smem:[#allocation33_spill]]  ;;  %s1438_s20 = sadd.s32 4294967294, %s2259_s28  }
 0x12e   : > { %1685 = dma.hbm_to_vmem [thread:$0]  (!%p2395_p6), %s2881_s12, 16, %s487_s24, [#allocation22]  }
 0x12f   : > { %s2653_s18 = sadd.s32 1, %s2259_s28   ;;  %s42_s13 = sadd.s32 1, %s2255_s27 }
 0x130   : > { %s39_s14 = ssub.s32 %s2259_s28, %s2653_s18  ;;  %p49_p13 = scmp.ne.s32.totalorder %s2255_s27, %s2251_s26 }
 0x131   : > { %p40_p8 = scmp.eq.s32.totalorder %s39_s14, 0  ;;  %p50_p0 = scmp.eq.s32.totalorder %s2259_s28, 0 }
 0x132   : > { %p55_p1 = scmp.ne.s32.totalorder %s2251_s26, %s2247_s25  ;;  %p337_p7 = scmp.eq.s32.totalorder %s1438_s20, 1 }
 0x133   : > { %s2664_s29 = scalar_select %p40_p8, %s2255_s27, %s42_s13  }
 0x134   : > { %p2666_p3 = por %p50_p0, %p49_p13  ;;  %p2907_p2 = scmp.eq.s32.totalorder %s2905_s16, 0 }
 0x135   : > { %p331_p5 = scmp.eq.s32.totalorder %s2905_s16, 1  ;;  %p1706_p9 = scmp.lt.s32.totalorder %s2259_s28, 2 }
 0x136   : > { %p2672_p6 = por %p2907_p2, %p55_p1  ;;  %s497_s23 = sand.u32 1, %s2255_s27  }
 0x137   : > { %p2679_p10 = por %p331_p5, %p49_p13  ;;  %p2683_p11 = por %p337_p7, %p55_p1 }
 0x138   : > { %s1453_s22 = sshll.u32 %s497_s23, 3  ;;  %s1454_s30 = sshll.u32 %s2259_s28, 7 }
 0x139   : > { %s2909_s3 = scalar_select %p2679_p10, 1, 0 }
 0x13a   : > { %s2910_s21 = scalar_select %p2683_p11, 1, 0 }
 0x13b   : > { %s2911_s1 = sld [smem:[#allocation35_spill]]  ;;  %s501_s16 = scalar_lea.vmem [#allocation3], %s1453_s22 }
 0x13c   : > { %s508_s20 = sshll.u32 %s501_s16, 4  ;;  %p2697_p12 = pnand %p1706_p9, %p2666_p3  ;;  %s2693_s20 = int_to_ptr.vmem [resolvable:$true] %s508_s20 }
 0x13d   : > { %s498_s13 = scalar_lea.sflag [#allocation4], %s497_s23 }
 0x13e   : > { %p2141_p8 = pneg %p2697_p12 }
 0x141   : > { %s2691_s15 = scalar_lea.hbm %s2911_s1, %s1454_s30  ;;  %s2144_s19 = scalar_lea.hbm %s2911_s1, 256 }
 0x142   : > { %s2139_s2 = scalar_lea.hbm %s2691_s15, 128  ;;  %p2145_p1 = scmp.lt.u32.totalorder %s2691_s15, %s2911_s1 }
 0x143   : > { %p2140_p4 = scmp.ne.s32.totalorder %s2691_s15, %s2139_s2  ;;  %p2146_p3 = scmp.lt.u32.totalorder %s2144_s19, %s2139_s2 }
 0x144   : > { %p2148_p5 = scmp.lt.u32.totalorder %s2139_s2, %s2691_s15 }
 0x145   : > { %p2142_p13 = pnand %p2141_p8, %p2140_p4  ;;  %p2147_p2 = por %p2146_p3, %p2145_p1 }
 0x147   : > { %p2143_p0 = pneg %p2142_p13  ;;  %p2149_p7 = por %p2148_p5, %p2147_p2 }
 0x149   : > { %p2150_p9 = pnand %p2149_p7, %p2143_p0 }
 0x14b   : > { %2153 = shalt.err (!%p2150_p9)
}
 0x14c   : > { %s2154_s23 = scalar_lea.vmem %s2693_s20, 128  ;;  %s2275_s16 = smov [#allocation3]  }
 0x14d   : > { %p2155_p4 = scmp.ne.s32.totalorder %s2693_s20, %s2154_s23  ;;  %s2159_s22 = sshll.u32 %s2275_s16, 4  ;;  %s2160_s22 = int_to_ptr.vmem [resolvable:$false] %s2159_s22 }
 0x14e   : > { %s2161_s30 = scalar_lea.vmem %s2160_s22, 256  ;;  %p2162_p10 = scmp.lt.s32.totalorder %s2693_s20, %s2160_s22 }
 0x14f   : > { %p2157_p13 = pnand %p2155_p4, %p2141_p8  ;;  %p2163_p1 = scmp.lt.s32.totalorder %s2161_s30, %s2154_s23 }
 0x151   : > { %p2158_p11 = pneg %p2157_p13  ;;  %p2164_p3 = por %p2163_p1, %p2162_p10 }
 0x153   : > { %p2165_p2 = pnand %p2164_p3, %p2158_p11 }
 0x155   : > { %2168 = shalt.err (!%p2165_p2)
}
 0x156   : > { %1689 = dma.hbm_to_vmem [thread:$0]  (!%p2697_p12), %s2691_s15, 128, %s2693_s20, %s498_s13  }
 0x157   : > { %s2913_s2 = sld [smem:[#allocation34_spill]] }
 0x15d   : > { %p2914_p0 = scmp.ne.s32.totalorder %s2913_s2, 0 }
 0x15e   : > { %s2729_s19 = sand.u32 (!%p2914_p0), 1, %s2251_s26  }
 0x15f   : > { %517 = sbr.rel (%p2914_p0) target bundleno = 2918 (0xb66), region = 72  ;;  %s1456_s0 = sshll.u32 (!%p2914_p0), %s2729_s19, 3 }
 0x160   : > { %s520_s17 = scalar_lea.sflag (!%p2914_p0), [#allocation4], %s2729_s19  ;;  %s523_s23 = scalar_lea.vmem (!%p2914_p0), [#allocation3], %s1456_s0 }
 0x166   : > { %2214 = dma.done.wait (%p2672_p6), %s520_s17, 128  }
 0x167   : > { %2216 = vsyncadd (%p2672_p6), %s520_s17, 4294967168  ;;  %s2915_s15 = sld [smem:[#allocation33_spill]] }
 0x16d   : > { %p2916_p10 = scmp.eq.s32.totalorder %s2915_s15, 0 }
 0x16f   : > { %2218 = dma.done.wait (%p2916_p10), [#allocation7], 32   ;;  %p2917_p11 = pmov %p2916_p10 }
 0x170   : > { %p2918_p12 = pmov %p2916_p10 }
 0x171   : > { %2220 = vsyncadd (%p2917_p11), [#allocation7], 4294967264 }
 0x172   : > { %2222 = dma.done.wait (%p2918_p12), [#allocation10], 272   ;;  %p2919_p8 = pmov %p2916_p10 }
 0x174   : > { %2224 = vsyncadd (%p2919_p8), [#allocation10], 4294967024  ;;  %p2920_p5 = pmov %p2919_p8 }
 0x176   : > { %2226 = dma.done.wait (%p2920_p5), [#allocation13], 272   ;;  %p2921_p7 = pmov %p2920_p5 }
 0x177   : > { %p2922_p6 = pmov %p2920_p5 }
 0x178   : > { %2228 = vsyncadd (%p2921_p7), [#allocation13], 4294967024 }
 0x179   : > { %2230 = dma.done.wait (%p2922_p6), [#allocation16], 32   ;;  %p2923_p9 = pmov %p2920_p5 }
 0x17a   : > { %p2924_p4 = pmov %p2920_p5 }
 0x17b   : > { %2232 = vsyncadd (%p2923_p9), [#allocation16], 4294967264 }
 0x17c   : > { %2234 = dma.done.wait (%p2924_p4), [#allocation19], 272   ;;  %p2925_p13 = pmov %p2924_p4 }
 0x17d   : > { %p2926_p1 = pmov %p2924_p4 }
 0x17e   : > { %2236 = vsyncadd (%p2925_p13), [#allocation19], 4294967024 }
 0x17f   : > { %2238 = dma.done.wait (%p2926_p1), [#allocation22], 1040   ;;  %p2927_p3 = pmov %p2926_p1 }
 0x180   : > { %vm618_vm0 = vcmask 258048   ;;  %v2763_v0 = vld [vmem:[%s523_s23] sm:$0x1f]  ;;  %v1775_v7 = vld [vmem:[#allocation9] sm:$0xff]   ;;  %v2276_v8 = vmov 0.0   ;;  %vm2277_vm1 = vmmov 0  }
 0x181   : > { %2240 = vsyncadd (%p2927_p3), [#allocation22], 4294966256  ;;  %v619_v1 = vsel %vm618_vm0, %v2763_v0, 0.0  ;;  %1529 = vmatprep.subr.bf16.mxu0 %v2276_v8  ;;  %1533 = vmatprep.mubr.msk.bf16.mxu0 %vm2277_vm1, %v2276_v8  ;;  %v1776_v9 = vld [vmem:[#allocation9 + $0x8] sm:$0xff]   ;;  %v1470_v14 = vld [vmem:[#allocation6] ss:$0 sm:$0xff] }
 0x182   : > { %620 = vadd.xlane.f32.xlu0 %v619_v1  ;;  %1530 = vmatpush3.bf16.msra.mxu0 %v1775_v7  ;;  %v1471_v16 = vld [vmem:[#allocation8] ss:$0 sm:$0xff]  ;;  %vm671_vm2 = vcmask 261120   ;;  %v1472_v20 = vld [vmem:[#allocation11] ss:$0 sm:$0xff]  ;;  %s2278_s24 = smov 112  }
 0x183   : > { %1549 = vmatprep.subr.bf16.mxu1 %v2276_v8  ;;  %1531 = vmatprep.subr.bf16.mxu0 %v2276_v8  ;;  %s2279_s20 = smov 96   ;;  %s2280_s14 = smov 80   ;;  %vm719_vm3 = vcmask 130048   ;;  %vm767_vm4 = vcmask 36864   ;;  %vm786_vm5 = vcmask 1041408   ;;  %vm787_vm6 = vcmask 1042432  }
 0x184   : > { %1551 = vmatprep.mubr.msk.bf16.mxu1 %vm2277_vm1, %v2276_v8  ;;  %s2281_s13 = smov 48   ;;  %s2282_s16 = smov 64   ;;  %v2283_v56 = vmov 65535   ;;  %vm782_vm7 = vcmask 39936   ;;  %vm833_vm8 = vcmask 126976   ;;  %v1778_v7 = vld [vmem:[#allocation12 + $0x8] sm:$0xff]  }
 0x185   : > { %v788_v57 = vsel %vm786_vm5, 4294967295, %v2283_v56  ;;  %s2284_s22 = smov 16   ;;  %vm950_vm9 = vcmask 258176   ;;  %s1500_s30 = sshll.u32 %s2915_s15, 7 }
 0x186   : > { %1532 = vmatpush3.bf16.msra.mxu0 %v1776_v9  ;;  %v789_v58 = vsel %vm787_vm6, %v788_v57, 0  ;;  %s613_s2 = scalar_lea.vmem [#allocation24], %s1456_s0  ;;  %s1241_s0 = scalar_lea.sflag [#allocation5], %s2729_s19 }
 0x187   : > { %1537 = vmatprep.subr.bf16.mxu0 %v2276_v8  ;;  %s1254_s17 = sshll.u32 %s613_s2, 4  ;;  %p2929_p0 = scmp.ne.s32.totalorder %s2909_s3, 0  ;;  %s2826_s17 = int_to_ptr.vmem [resolvable:$true] %s1254_s17 }
 0x188   : > { %s2169_s15 = scalar_lea.vmem %s2826_s17, 128 }
 0x189   : > { %p2170_p2 = scmp.ne.s32.totalorder %s2826_s17, %s2169_s15 }
 0x18b   : > { %p2171_p10 = pnand %p2170_p2, %p2929_p0 }
 0x18d   : > { %p2172_p11 = pneg %p2171_p10 }
 0x20f   : > { %v621_v2 = vpop.xlane.xlu0 %620 }
 0x210   : > { %v623_v3 = vmul.f32 0.03125, %v621_v2 }
 0x212   : > { %v624_v4 = vsub.f32 %v2763_v0, %v623_v3 }
 0x214   : > { %v625_v5 = vmul.f32 %v624_v4, %v624_v4 }
 0x216   : > { %v626_v6 = vsel %vm618_vm0, %v625_v5, 0.0 }
 0x217   : > { %627 = vadd.xlane.f32.xlu0 %v626_v6  ;;  %v1777_v6 = vld [vmem:[#allocation12] sm:$0xff]  }
 0x2a4   : > { %v628_v10 = vpop.xlane.xlu0 %627 }
 0x2a5   : > { %v629_v11 = vmul.f32 0.03125, %v628_v10 }
 0x2a7   : > { %v630_v12 = vadd.f32 1e-06, %v629_v11 }
 0x2a9   : > { %1789 = vrsqrt.f32 %v630_v12 }
 0x2b3   : > { %v1790_v13 = vpop.eup %1789 }
 0x2b4   : > { %v632_v15 = vmul.f32 %v1790_v13, %v624_v4 }
 0x2b6   : > { %v639_v17 = vmul.f32 %v1470_v14, %v632_v15 }
 0x2b8   : > { %v646_v18 = vadd.f32 %v1471_v16, %v639_v17 }
 0x2ba   : > { %v651_v19 = vpack.c.bf16 %v646_v18, %v646_v18 }
 0x2bc   : > { %1534 = vmatmul.mubr.msk.bf16.vlgmr.msra.gmra.mrb[0].mxu0 %vm671_vm2, %v651_v19 }
 0x2bd   : > { %1539 = vmatprep.mubr.msk.bf16.mxu0 %vm2277_vm1, %v2276_v8 }
 0x38f   : > { %v709_v21 = vpop.f32.mrb[0].mxu0 }
 0x390   : > { %v710_v22 = vadd.f32 %v1472_v20, %v709_v21  ;;  %v1535_v23 = vpop.f32.mrb[1].mxu0  ;;  %v1480_v20 = vld [vmem:[#allocation14] ss:$0 sm:$0xff] }
 0x391   : > { %v712_v24 = vpop.f32.mrb[2].mxu0 }
 0x392   : > { %v715_v25 = vpack.c.bf16 %v710_v22, %v710_v22  ;;  %v1536_v26 = vpop.f32.mrb[3].mxu0 }
 0x394   : > { %835 = vrot.lane.b32.xlu0 %v715_v25, %s2278_s24  ;;  %717 = vrot.lane.b32.xlu1 %v715_v25, %s2279_s20  ;;  %s2928_s20 = sld [smem:[#allocation39_spill]] }
 0x398   : > { %837 = vrot.lane.b32.xlu1 %v715_v25, %s2280_s14 }
 0x39a   : > { %s2824_s14 = scalar_lea.hbm %s2928_s20, %s1500_s30 }
 0x406   : > { %v718_v27 = vpop.permute.xlu1 %717  ;;  %v836_v31 = vpop.permute.xlu0 %835 }
 0x407   : > { %v724_v28 = vsel %vm719_vm3, %v718_v27, 0 }
 0x408   : > { %1538 = vmatpush3.bf16.xpose.msra.mxu0 %v724_v28 }
 0x409   : > { %1543 = vmatprep.subr.bf16.mxu0 %v2276_v8 }
 0x40a   : > { %v838_v29 = vpop.permute.xlu1 %837 }
 0x40b   : > { %v843_v30 = vsel %vm719_vm3, %v838_v29, 0 }
 0x40c   : > { %1550 = vmatpush3.bf16.xpose.msra.mxu1 %v843_v30 }
 0x40d   : > { %1561 = vmatprep.subr.bf16.mxu1 %v2276_v8 }
 0x40f   : > { %1540 = vmatmul.mubr.msk.bf16.vlgmr.msra.gmra.mrb[4].mxu0 %vm719_vm3, %v715_v25 }
 0x410   : > { %1545 = vmatprep.mubr.msk.bf16.mxu0 %vm2277_vm1, %v2276_v8 }
 0x413   : > { %1552 = vmatmul.mubr.msk.bf16.vlgmr.msra.gmra.mrb[0].mxu1 %vm719_vm3, %v836_v31 }
 0x414   : > { %1565 = vmatprep.mubr.msk.bf16.mxu1 %vm2277_vm1, %v2276_v8  ;;  %1562 = vmatpush3.bf16.msra.mxu1 %v1777_v6 }
 0x415   : > { %1563 = vmatprep.subr.bf16.mxu1 %v2276_v8 }
 0x418   : > { %1564 = vmatpush3.bf16.msra.mxu1 %v1778_v7 }
 0x419   : > { %1577 = vmatprep.subr.bf16.mxu1 %v2276_v8 }
 0x4e2   : > { %v760_v32 = vpop.f32.mrb[4].mxu0 }
 0x4e3   : > { %v766_v33 = vmul.f32 0.25, %v760_v32  ;;  %v1541_v34 = vpop.f32.mrb[5].mxu0 }
 0x4e4   : > { %v763_v35 = vpop.f32.mrb[6].mxu0  ;;  %v1780_v34 = vld [vmem:[#allocation18 + $0x8] sm:$0xff]  }
 0x4e5   : > { %v1542_v36 = vpop.f32.mrb[7].mxu0  ;;  %v768_v37 = vsel %vm767_vm4, %v766_v33, -inf }
 0x4e6   : > { %v879_v38 = vpop.f32.mrb[0].mxu1  ;;  %769 = vmax.xlane.f32.xlu1 %v768_v37 }
 0x4e7   : > { %v885_v39 = vmul.f32 0.25, %v879_v38  ;;  %v1553_v40 = vpop.f32.mrb[1].mxu1  ;;  %v1484_v38 = vld [vmem:[#allocation15] ss:$0 sm:$0xff] }
 0x4e8   : > { %v882_v41 = vpop.f32.mrb[2].mxu1  ;;  %v1485_v40 = vld [vmem:[#allocation17] ss:$0 sm:$0xff] }
 0x4e9   : > { %v1554_v42 = vpop.f32.mrb[3].mxu1  ;;  %v886_v43 = vsel %vm767_vm4, %v885_v39, -inf }
 0x4ea   : > { %887 = vmax.xlane.f32.xlu0 %v886_v43 }
 0x500   : > { %898 = vrot.lane.b32.xlu0 %v715_v25, %s2281_s13  ;;  %s2285_s13 = smov [#allocation24]  }
 0x573   : > { %v770_v44 = vpop.xlane.xlu1 %769 }
 0x574   : > { %v771_v45 = vsub.f32 %v766_v33, %v770_v44  ;;  %v1779_v33 = vld [vmem:[#allocation18] sm:$0xff]   ;;  %v1781_v44 = vld [vmem:[#allocation21] sm:$0xff]  }
 0x576   : > { %v772_v46 = vmul.f32 1.442695, %v771_v45  ;;  %v1782_v45 = vld [vmem:[#allocation21 + $0x8] sm:$0xff]  }
 0x577   : > { %v888_v47 = vpop.xlane.xlu0 %887 }
 0x578   : > { %1791 = vpow2.f32 %v772_v46  ;;  %v889_v48 = vsub.f32 %v885_v39, %v888_v47  ;;  %v1783_v46 = vld [vmem:[#allocation21 + $0x10] sm:$0xff]   ;;  %v1784_v47 = vld [vmem:[#allocation21 + $0x18] sm:$0xff]  }
 0x57a   : > { %v890_v49 = vmul.f32 1.442695, %v889_v48  ;;  %v1785_v48 = vld [vmem:[#allocation21 + $0x20] sm:$0xff]  }
 0x57b   : > { %v899_v62 = vpop.permute.xlu0 %898 }
 0x57c   : > { %1793 = vpow2.f32 %v890_v49  ;;  %v904_v3 = vand.u32 %v899_v62, %v789_v58  ;;  %v1786_v49 = vld [vmem:[#allocation21 + $0x28] sm:$0xff]  }
 0x582   : > { %v1792_v50 = vpop.eup %1791 }
 0x583   : > { %v774_v51 = vsel %vm767_vm4, %v1792_v50, 0.0 }
 0x584   : > { %775 = vadd.xlane.f32.xlu1 %v774_v51  ;;  %v1788_v51 = vld [vmem:[#allocation21 + $0x38] sm:$0xff]  }
 0x586   : > { %v1794_v52 = vpop.eup %1793 }
 0x587   : > { %v892_v53 = vsel %vm767_vm4, %v1794_v52, 0.0 }
 0x588   : > { %893 = vadd.xlane.f32.xlu1 %v892_v53 }
 0x599   : > { %780 = vrot.lane.b32.xlu1 %v715_v25, %s2282_s16  ;;  %s2173_s16 = sshll.u32 %s2285_s13, 4  ;;  %s2174_s16 = int_to_ptr.vmem [resolvable:$false] %s2173_s16 }
 0x59a   : > { %p2176_p12 = scmp.lt.s32.totalorder %s2826_s17, %s2174_s16 }
 0x611   : > { %v776_v54 = vpop.xlane.xlu1 %775 }
 0x612   : > { %1795 = vrcp.f32 %v776_v54 }
 0x615   : > { %v894_v55 = vpop.xlane.xlu1 %893 }
 0x616   : > { %1797 = vrcp.f32 %v894_v55 }
 0x619   : > { %v781_v59 = vpop.permute.xlu1 %780 }
 0x61a   : > { %v791_v60 = vand.u32 %v789_v58, %v781_v59 }
 0x61c   : > { %v1796_v61 = vpop.eup %1795  ;;  %1544 = vmatpush3.bf16.msra.mxu0 %v791_v60 }
 0x61d   : > { %v778_v63 = vmul.f32 %v1796_v61, %v1792_v50  ;;  %1555 = vmatprep.subr.bf16.mxu0 %v2276_v8  ;;  %v1787_v50 = vld [vmem:[#allocation21 + $0x30] sm:$0xff]  }
 0x61f   : > { %v779_v1 = vpack.c.bf16 %v778_v63, %v778_v63 }
 0x620   : > { %v1798_v2 = vpop.eup %1797 }
 0x621   : > { %1546 = vmatmul.mubr.msk.bf16.vlgmr.msra.gmra.mrb[8].mxu0 %vm782_vm7, %v779_v1  ;;  %v896_v4 = vmul.f32 %v1798_v2, %v1794_v52  ;;  %v1486_v52 = vld [vmem:[#allocation20] ss:$0 sm:$0xff] }
 0x622   : > { %1556 = vmatpush3.bf16.msra.mxu0 %v904_v3  ;;  %1557 = vmatprep.mubr.msk.bf16.mxu0 %vm2277_vm1, %v2276_v8 }
 0x623   : > { %1569 = vmatprep.subr.bf16.mxu0 %v2276_v8  ;;  %v897_v5 = vpack.c.bf16 %v896_v4, %v896_v4  ;;  %v1490_v4 = vld [vmem:[#allocation23] ss:$0 sm:$0xff] }
 0x629   : > { %1558 = vmatmul.mubr.msk.bf16.vlgmr.msra.gmra.mrb[12].mxu0 %vm782_vm7, %v897_v5 }
 0x62a   : > { %1573 = vmatprep.mubr.msk.bf16.mxu0 %vm2277_vm1, %v2276_v8  ;;  %1570 = vmatpush3.bf16.msra.mxu0 %v1779_v33 }
 0x62b   : > { %1571 = vmatprep.subr.bf16.mxu0 %v2276_v8 }
 0x62e   : > { %1572 = vmatpush3.bf16.msra.mxu0 %v1780_v34 }
 0x6f4   : > { %v827_v9 = vpop.f32.mrb[8].mxu0 }
 0x6f5   : > { %834 = vst.msk [vmem:[#allocation2] sm:$0x1f] %vm833_vm8, %v827_v9  ;;  %v1547_v10 = vpop.f32.mrb[9].mxu0 }
 0x6f6   : > { %v830_v11 = vpop.f32.mrb[10].mxu0 }
 0x6f7   : > { %v1548_v12 = vpop.f32.mrb[11].mxu0 }
 0x6fc   : > { %v940_v13 = vpop.f32.mrb[12].mxu0 }
 0x6fd   : > { %947 = vrot.lane.b32.xlu1 %v940_v13, %s2284_s22  ;;  %v1559_v14 = vpop.f32.mrb[13].mxu0  ;;  %s2175_s22 = scalar_lea.vmem %s2174_s16, 256 }
 0x6fe   : > { %v943_v15 = vpop.f32.mrb[14].mxu0  ;;  %p2177_p8 = scmp.lt.s32.totalorder %s2175_s22, %s2169_s15 }
 0x6ff   : > { %v1560_v16 = vpop.f32.mrb[15].mxu0 }
 0x700   : > { %p2178_p5 = por %p2177_p8, %p2176_p12 }
 0x702   : > { %p2179_p7 = pnand %p2178_p5, %p2172_p11 }
 0x76f   : > { %v948_v17 = vpop.permute.xlu1 %947 }
 0x770   : > { %951 = vst.msk [vmem:[#allocation2] sm:$0x1f] %vm950_vm9, %v948_v17 }
 0x777   : > { %v952_v18 = vld [vmem:[#allocation2] sm:$0x1f] }
 0x778   : > { %v957_v19 = vpack.c.bf16 %v952_v18, %v952_v18 }
 0x77a   : > { %1566 = vmatmul.mubr.msk.bf16.vlgmr.msra.gmra.mrb[4].mxu1 %vm671_vm2, %v957_v19 }
 0x77b   : > { %1593 = vmatprep.mubr.msk.bf16.mxu1 %vm2277_vm1, %v2276_v8  ;;  %1578 = vmatpush3.bf16.msra.mxu1 %v1781_v44 }
 0x77c   : > { %1579 = vmatprep.subr.bf16.mxu1 %v2276_v8 }
 0x77f   : > { %1580 = vmatpush3.bf16.msra.mxu1 %v1782_v45 }
 0x780   : > { %1581 = vmatprep.subr.bf16.mxu1 %v2276_v8 }
 0x783   : > { %1582 = vmatpush3.bf16.msra.mxu1 %v1783_v46 }
 0x784   : > { %1583 = vmatprep.subr.bf16.mxu1 %v2276_v8 }
 0x787   : > { %1584 = vmatpush3.bf16.msra.mxu1 %v1784_v47 }
 0x788   : > { %1585 = vmatprep.subr.bf16.mxu1 %v2276_v8 }
 0x78b   : > { %1586 = vmatpush3.bf16.msra.mxu1 %v1785_v48 }
 0x78c   : > { %1587 = vmatprep.subr.bf16.mxu1 %v2276_v8 }
 0x78f   : > { %1588 = vmatpush3.bf16.msra.mxu1 %v1786_v49 }
 0x790   : > { %1589 = vmatprep.subr.bf16.mxu1 %v2276_v8 }
 0x793   : > { %1590 = vmatpush3.bf16.msra.mxu1 %v1787_v50 }
 0x794   : > { %1591 = vmatprep.subr.bf16.mxu1 %v2276_v8 }
 0x797   : > { %1592 = vmatpush3.bf16.msra.mxu1 %v1788_v51 }
 0x84d   : > { %v1014_v21 = vpop.f32.mrb[4].mxu1 }
 0x84e   : > { %v1015_v22 = vadd.f32 %v1480_v20, %v1014_v21  ;;  %v1567_v23 = vpop.f32.mrb[5].mxu1 }
 0x84f   : > { %v1017_v24 = vpop.f32.mrb[6].mxu1 }
 0x850   : > { %v2802_v25 = vadd.f32 %v1015_v22, %v2763_v0  ;;  %v1568_v26 = vpop.f32.mrb[7].mxu1 }
 0x852   : > { %v1023_v27 = vsel %vm618_vm0, %v2802_v25, 0.0 }
 0x853   : > { %1024 = vadd.xlane.f32.xlu1 %v1023_v27 }
 0x8e0   : > { %v1025_v28 = vpop.xlane.xlu1 %1024 }
 0x8e1   : > { %v1026_v29 = vmul.f32 0.03125, %v1025_v28 }
 0x8e3   : > { %v1027_v30 = vsub.f32 %v2802_v25, %v1026_v29 }
 0x8e5   : > { %v1028_v31 = vmul.f32 %v1027_v30, %v1027_v30 }
 0x8e7   : > { %v1029_v32 = vsel %vm618_vm0, %v1028_v31, 0.0 }
 0x8e8   : > { %1030 = vadd.xlane.f32.xlu0 %v1029_v32 }
 0x975   : > { %v1031_v0 = vpop.xlane.xlu0 %1030 }
 0x976   : > { %v1032_v35 = vmul.f32 0.03125, %v1031_v0 }
 0x978   : > { %v1033_v36 = vadd.f32 1e-06, %v1032_v35 }
 0x97a   : > { %1799 = vrsqrt.f32 %v1033_v36 }
 0x984   : > { %v1800_v37 = vpop.eup %1799 }
 0x985   : > { %v1035_v39 = vmul.f32 %v1800_v37, %v1027_v30 }
 0x987   : > { %v1042_v41 = vmul.f32 %v1484_v38, %v1035_v39 }
 0x989   : > { %v1049_v42 = vadd.f32 %v1485_v40, %v1042_v41 }
 0x98b   : > { %v1054_v43 = vpack.c.bf16 %v1049_v42, %v1049_v42 }
 0x98d   : > { %1574 = vmatmul.mubr.msk.bf16.vlgmr.msra.gmra.mrb[16].mxu0 %vm671_vm2, %v1054_v43 }
 0xa60   : > { %v1111_v53 = vpop.f32.mrb[16].mxu0 }
 0xa61   : > { %v1112_v54 = vadd.f32 %v1486_v52, %v1111_v53  ;;  %v1575_v55 = vpop.f32.mrb[17].mxu0 }
 0xa62   : > { %v1114_v56 = vpop.f32.mrb[18].mxu0 }
 0xa63   : > { %v1117_v57 = vmul.f32 %v1112_v54, %v1112_v54  ;;  %v1576_v58 = vpop.f32.mrb[19].mxu0 }
 0xa65   : > { %v1118_v59 = vmul.f32 %v1117_v57, %v1112_v54 }
 0xa67   : > { %v1119_v60 = vmul.f32 0.044715, %v1118_v59 }
 0xa69   : > { %v1120_v61 = vadd.f32 %v1119_v60, %v1112_v54 }
 0xa6b   : > { %v1121_v62 = vmul.f32 0.7978846, %v1120_v61 }
 0xa6d   : > { %1801 = vtanh.f32 %v1121_v62 }
 0xa77   : > { %v1802_v63 = vpop.eup %1801 }
 0xa78   : > { %v1123_v1 = vadd.f32 1.0, %v1802_v63 }
 0xa7a   : > { %v1124_v2 = vmul.f32 0.5, %v1123_v1 }
 0xa7c   : > { %v1125_v3 = vmul.f32 %v1124_v2, %v1112_v54 }
 0xa7e   : > { %v1142_v8 = vpack.c.bf16 %v1125_v3, %v1125_v3 }
 0xa80   : > { %1594 = vmatmul.mubr.bf16.vlgmr.msra.gmra.mrb[8].mxu1 %v1142_v8 }
 0xb53   : > { %v1232_v5 = vpop.f32.mrb[8].mxu1 }
 0xb54   : > { %v1233_v6 = vadd.f32 %v1490_v4, %v1232_v5  ;;  %v1595_v7 = vpop.f32.mrb[9].mxu1 }
 0xb55   : > { %v1235_v9 = vpop.f32.mrb[10].mxu1 }
 0xb56   : > { %v1238_v10 = vadd.f32 %v1233_v6, %v2802_v25  ;;  %v1596_v11 = vpop.f32.mrb[11].mxu1 }
 0xb58   : > { %1239 = vst.msk [vmem:[%s613_s2] sm:$0x1f] %vm618_vm0, %v1238_v10 }
 0xb59   : > { %2182 = shalt.err (!%p2179_p7)
}
 0xb5a   : > { %s2183_s19 = scalar_lea.hbm %s2824_s14, 128  ;;  %s2187_s23 = scalar_lea.hbm %s2928_s20, 256 }
 0xb5b   : > { %p2184_p6 = scmp.ne.s32.totalorder %s2824_s14, %s2183_s19  ;;  %p2188_p13 = scmp.lt.u32.totalorder %s2824_s14, %s2928_s20 }
 0xb5c   : > { %p2189_p1 = scmp.lt.u32.totalorder %s2187_s23, %s2183_s19  ;;  %p2191_p2 = scmp.lt.u32.totalorder %s2183_s19, %s2824_s14 }
 0xb5d   : > { %p2185_p9 = pnand %p2184_p6, %p2929_p0 }
 0xb5e   : > { %p2190_p3 = por %p2189_p1, %p2188_p13 }
 0xb5f   : > { %p2186_p4 = pneg %p2185_p9 }
 0xb60   : > { %p2192_p10 = por %p2191_p2, %p2190_p3 }
 0xb62   : > { %p2193_p11 = pnand %p2192_p10, %p2186_p4 }
 0xb64   : > { %2196 = shalt.err (!%p2193_p11)
}
 0xb65   : > { %1647 = dma.vmem_to_hbm [thread:$0]  (%p2929_p0), %s2826_s17, 128, %s2824_s14, %s1241_s0  }
 0xb66 PF: > { %s1266_s15 = sand.u32 1, %s2247_s25   ;;  %p2930_p12 = scmp.ne.s32.totalorder %s2910_s21, 0 }
 0xb67   : > { %p2931_p8 = scmp.ge.s32.totalorder %s2259_s28, 2  ;;  %s1267_s16 = scalar_lea.sflag [#allocation5], %s1266_s15 }
 0xb69   : > { %p1691_p5 = pnand %p2931_p8, %p2930_p12 }
 0xb6b   : > { %2242 = dma.done.wait (!%p1691_p5), %s1267_s16, 128  }
 0xb6c   : > { %2244 = vsyncadd (!%p1691_p5), %s1267_s16, 4294967168  ;;  %p32_p7 = scmp.ge.s32.totalorder %s2653_s18, 4   ;;  %s2932_s25 = smov %s2251_s26 }
 0xb6d   : > { %s2933_s26 = smov %s2255_s27  ;;  %s2934_s27 = smov %s2664_s29 }
 0xb6e   : > { %s2935_s28 = smov %s2653_s18  ;;  %34 = sbr.rel (!%p32_p7) target bundleno = 17 (0x11), region = 165 }
 0xb75   :  { %1272 = vsyncpa [#allocation4], 1 }
 0xb76   :  { %1274 = vsyncpa [#allocation4 + $0x1], 1 }
 0xb77   :  { %1275 = vsyncpa [#allocation7], 1 }
 0xb78   :  { %1276 = vsyncpa [#allocation10], 1 }
 0xb79   :  { %1277 = vsyncpa [#allocation13], 1 }
 0xb7a   :  { %1278 = vsyncpa [#allocation16], 1 }
 0xb7b   :  { %1279 = vsyncpa [#allocation19], 1 }
 0xb7c   :  { %1280 = vsyncpa [#allocation22], 1 }
 0xb7d   :  { %1281 = vsyncpa [#allocation5], 1 }
 0xb7e   :  { %1283 = vsyncpa [#allocation5 + $0x1], 1 }

</bundles_post_ra>
